<compile_context>
chip_gen: v7x
topology: tpu7x:2x2x1
jax: 0.10.0
libtpu: 0.0.40
codegen_flags: <defaults>
</compile_context>

<pallas_src>
import functools

import jax
import jax.numpy as jnp
import numpy as np
from jax import lax
from jax.experimental import pallas as pl
from jax.experimental.pallas import tpu as pltpu

_EPS = 1e-12


def _round_up(a: int, b: int) -> int:
    return -(-a // b) * b


# ----------------------------------------------------------------------------
# Kernel 1: power iteration -> updated u, v and 1/sigma (no weight rewrite).
#   w : (O, K)   u : (O, 1) column   v : (1, K) row
# ----------------------------------------------------------------------------
def _spectral_stats_kernel(w_ref, u_ref, v_ref,
                           u_out_ref, v_out_ref, inv_sigma_ref,
                           *, power_iterations):
    w = w_ref[...].astype(jnp.float32)            # (O, K)
    u = u_ref[...].astype(jnp.float32)            # (O, 1)
    v = v_ref[...].astype(jnp.float32)            # (1, K)

    w_v = None
    for _ in range(power_iterations):
        # v <- l2normalize(W^T u): contraction over O as broadcast-mul +
        # sublane reduce (no transpose of W; exact f32 elementwise math).
        wt_u = jnp.sum(w * u, axis=0, keepdims=True)                      # (1, K)
        v = wt_u * lax.rsqrt(jnp.sum(wt_u * wt_u, axis=1, keepdims=True)
                             + _EPS * _EPS)
        # u <- l2normalize(W v): contraction over K as broadcast-mul + lane reduce.
        w_v = jnp.sum(w * v, axis=1, keepdims=True)                       # (O, 1)
        u = w_v * lax.rsqrt(jnp.sum(w_v * w_v, axis=0, keepdims=True)
                            + _EPS * _EPS)

    # sigma = u . (W v); W v equals the last-iteration w_v (v unchanged since),
    # so no extra pass over W is needed.
    sigma = jnp.sum(u * w_v, axis=0, keepdims=True)                       # (1, 1)
    inv_sigma_ref[...] = 1.0 / sigma
    u_out_ref[...] = u.astype(u_out_ref.dtype)
    v_out_ref[...] = v.astype(v_out_ref.dtype)


def spectral_stats(w2, u_col, v_row, power_iterations=1):
    O, K = w2.shape
    kern = functools.partial(_spectral_stats_kernel,
                             power_iterations=power_iterations)
    return pl.pallas_call(
        kern,
        out_shape=(
            jax.ShapeDtypeStruct((O, 1), u_col.dtype),
            jax.ShapeDtypeStruct((1, K), v_row.dtype),
            jax.ShapeDtypeStruct((1, 1), jnp.float32),
        ),
        grid=(1,),
        in_specs=[
            pl.BlockSpec((O, K), lambda i: (0, 0)),
            pl.BlockSpec((O, 1), lambda i: (0, 0)),
            pl.BlockSpec((1, K), lambda i: (0, 0)),
        ],
        out_specs=(
            pl.BlockSpec((O, 1), lambda i: (0, 0)),
            pl.BlockSpec((1, K), lambda i: (0, 0)),
            pl.BlockSpec((1, 1), lambda i: (0, 0)),
        ),
    )(w2, u_col, v_row)


# ----------------------------------------------------------------------------
# Kernel 2: conv with in-VMEM im2col, 1/sigma scaling and bias fused in.
#   x_ref : (H+2ph, W+2pw, C)  bf16  one padded image (batch dim squeezed)
#   w_ref : (KH*KW, C, O_pad)  bf16  tap-major weight, O padded to 128 lanes
#   b_ref : (1, O_pad) f32     s_ref : (1, 1) f32 (= 1/sigma)
#   o_ref : (H*W, O_pad) f32   lane-dense output slab
# ----------------------------------------------------------------------------
def _conv_im2col_kernel(x_ref, w_ref, b_ref, s_ref, o_ref, *, H, W, KH, KW):
    x = x_ref[...]                                   # (Hp, Wp, C) bf16
    C = x_ref.shape[-1]
    O_pad = o_ref.shape[-1]
    acc = jnp.zeros((H * W, O_pad), jnp.float32)
    for kh in range(KH):
        for kw in range(KW):
            # Shifted window of the padded input, built in VMEM (no HBM im2col).
            win = x[kh:kh + H, kw:kw + W, :].reshape(H * W, C)
            acc = acc + jnp.dot(win, w_ref[kh * KW + kw],
                                preferred_element_type=jnp.float32)
    o_ref[...] = (acc * s_ref[...] + b_ref[...]).astype(o_ref.dtype)


def conv2d_same_scaled(x_nhwc_pad, w_taps, bias_row, inv_sigma, *, H, W, KH, KW):
    N, Hp, Wp, C = x_nhwc_pad.shape
    O_pad = w_taps.shape[-1]
    kern = functools.partial(_conv_im2col_kernel, H=H, W=W, KH=KH, KW=KW)
    return pl.pallas_call(
        kern,
        out_shape=jax.ShapeDtypeStruct((N, H * W, O_pad), jnp.float32),
        grid=(N,),
        in_specs=[
            pl.BlockSpec((None, Hp, Wp, C), lambda n: (n, 0, 0, 0)),
            pl.BlockSpec((KH * KW, C, O_pad), lambda n: (0, 0, 0)),
            pl.BlockSpec((1, O_pad), lambda n: (0, 0)),
            pl.BlockSpec((1, 1), lambda n: (0, 0)),
        ],
        out_specs=pl.BlockSpec((None, H * W, O_pad), lambda n: (n, 0, 0)),
        compiler_params=pltpu.CompilerParams(
            dimension_semantics=("parallel",)),
    )(x_nhwc_pad, w_taps, bias_row, inv_sigma)


# ----------------------------------------------------------------------------
# SpectralNorm(Conv2d).forward
# ----------------------------------------------------------------------------
def spectral_norm_conv2d(x, w_bar, bias, u, v, power_iterations=1):
    """x: (N,C,H,W), w_bar: (O,C,kh,kw), bias: (O,), u: (O,), v: (C*kh*kw,)."""
    N, C, H, W = x.shape
    O, Ci, KH, KW = w_bar.shape
    assert Ci == C and power_iterations >= 1
    K = C * KH * KW

    # --- SpectralNorm._update_u_v (Pallas kernel 1): only u, v, 1/sigma. ---
    w2 = w_bar.reshape(O, K)                          # K order = (c, kh, kw)
    u_new, v_new, inv_sigma = spectral_stats(
        w2, u.reshape(O, 1), v.reshape(1, K),
        power_iterations=power_iterations)

    # --- module.forward: Conv2d, stride 1, padding (KH//2, KW//2).
    #     NOTE: this matches PyTorch padding=1 / "SAME" only for odd kernels.
    ph, pw = KH // 2, KW // 2
    x_nhwc_pad = jnp.pad(x.transpose(0, 2, 3, 1),
                         ((0, 0), (ph, ph), (pw, pw), (0, 0))
                         ).astype(jnp.bfloat16)       # bf16 MXU operands

    O_pad = _round_up(O, 128)                         # lane-dense output stores
    # Tap-major weight: w_taps[kh*KW+kw, c, o] = w_bar[o, c, kh, kw].
    w_taps = jnp.pad(w_bar.transpose(2, 3, 1, 0).reshape(KH * KW, C, O),
                     ((0, 0), (0, 0), (0, O_pad - O))).astype(jnp.bfloat16)
    bias_row = jnp.pad(bias, (0, O_pad - O)).reshape(1, O_pad).astype(jnp.float32)

    # TODO(synk): for very large H*W a single image block may exceed VMEM;
    # tile image rows with a halo via manual DMA (pl.ANY + make_async_copy).
    out_flat = conv2d_same_scaled(x_nhwc_pad, w_taps, bias_row, inv_sigma,
                                  H=H, W=W, KH=KH, KW=KW)   # (N, H*W, O_pad)

    out = (out_flat[:, :, :O].reshape(N, H, W, O)
           .transpose(0, 3, 1, 2).astype(x.dtype))          # NCHW

    return out, u_new.reshape(O), v_new.reshape(K)


if __name__ == "__main__":
    key = jax.random.PRNGKey(0)
    k1, k2, k3, k4, k5 = jax.random.split(key, 5)

    N, C, H, W = 2, 4, 16, 16
    O, KH, KW = 8, 3, 3

    x = jax.random.normal(k1, (N, C, H, W), jnp.float32)
    # SpectralNorm(nn.Conv2d(4, 8, 3, padding=1)) parameters
    w_bar = jax.random.normal(k2, (O, C, KH, KW), jnp.float32) * 0.1
    bias = jax.random.normal(k3, (O,), jnp.float32) * 0.1
    u0 = jax.random.normal(k4, (O,), jnp.float32)
    v0 = jax.random.normal(k5, (C * KH * KW,), jnp.float32)
    u0 = u0 / (jnp.linalg.norm(u0) + _EPS)      # _make_params l2-normalizes u, v
    v0 = v0 / (jnp.linalg.norm(v0) + _EPS)

    fwd = jax.jit(spectral_norm_conv2d, static_argnames=("power_iterations",))
    out, u_new, v_new = fwd(x, w_bar, bias, u0, v0, power_iterations=1)
    jax.block_until_ready((out, u_new, v_new))

    # ---- float64 numpy reference (independent shifted-window conv) ----
    x64 = np.asarray(x, np.float64)
    w64 = np.asarray(w_bar, np.float64)
    b64 = np.asarray(bias, np.float64)
    w2_64 = w64.reshape(O, -1)
    u_n = np.asarray(u0, np.float64)
    v_n = np.asarray(v0, np.float64)
    for _ in range(1):
        v_n = w2_64.T @ u_n
        v_n = v_n / (np.linalg.norm(v_n) + _EPS)
        u_n = w2_64 @ v_n
        u_n = u_n / (np.linalg.norm(u_n) + _EPS)
    sigma = float(u_n @ (w2_64 @ v_n))

    def conv_nchw(x_, w_):
        xp = np.pad(x_, ((0, 0), (0, 0), (KH // 2, KH // 2), (KW // 2, KW // 2)))
        o_ = np.zeros((N, O, H, W), np.float64)
        for kh in range(KH):
            for kw in range(KW):
                o_ += np.einsum("nchw,oc->nohw",
                                xp[:, :, kh:kh + H, kw:kw + W], w_[:, :, kh, kw])
        return o_

    ref_full = conv_nchw(x64, w64 / sigma) + b64[None, :, None, None]
    xb = np.asarray(x.astype(jnp.bfloat16).astype(jnp.float32), np.float64)
    wb = np.asarray(w_bar.astype(jnp.bfloat16).astype(jnp.float32), np.float64)
    ref_tight = conv_nchw(xb, wb) / sigma + b64[None, :, None, None]

    out_np = np.asarray(out, np.float64)
    assert out.shape == (N, O, H, W)
    # Tight check against a reference using the same bf16-rounded operands.
    assert np.max(np.abs(out_np - ref_tight)) < 2e-3
    # Looser check against the full-precision reference (bf16 operand effect).
    assert np.max(np.abs(out_np - ref_full)) < 5e-2
    assert np.max(np.abs(np.asarray(u_new, np.float64) - u_n)) < 1e-3
    assert np.max(np.abs(np.asarray(v_new, np.float64) - v_n)) < 1e-3
    print("KERNEL_OK")
</pallas_src>

<mosaic_0001>
module attributes {stable_mosaic.version = 11 : i64} {
  func.func @_spectral_stats_kernel(%arg0: i32, %arg1: memref<8x36xf32, #tpu.memory_space<vmem>>, %arg2: memref<8x1xf32, #tpu.memory_space<vmem>>, %arg3: memref<1x36xf32, #tpu.memory_space<vmem>>, %arg4: memref<8x1xf32, #tpu.memory_space<vmem>>, %arg5: memref<1x36xf32, #tpu.memory_space<vmem>>, %arg6: memref<1x1xf32, #tpu.memory_space<vmem>>) attributes {dimension_semantics = [#tpu.dimension_semantics<arbitrary>], iteration_bounds = array<i64: 1>, scalar_prefetch = 0 : i64, scratch_operands = 0 : i64, tpu.core_type = #tpu.core_type<tc>, window_params = [{pipeline_mode = #tpu.pipeline_mode<synchronous>, transform_indices = @transform_0, window_bounds = array<i64: 8, 36>}, {pipeline_mode = #tpu.pipeline_mode<synchronous>, transform_indices = @transform_1, window_bounds = array<i64: 8, 1>}, {pipeline_mode = #tpu.pipeline_mode<synchronous>, transform_indices = @transform_2, window_bounds = array<i64: 1, 36>}, {pipeline_mode = #tpu.pipeline_mode<synchronous>, transform_indices = @transform_3, window_bounds = array<i64: 8, 1>}, {pipeline_mode = #tpu.pipeline_mode<synchronous>, transform_indices = @transform_4, window_bounds = array<i64: 1, 36>}, {pipeline_mode = #tpu.pipeline_mode<synchronous>, transform_indices = @transform_5, window_bounds = array<i64: 1, 1>}]} {
    %c0 = arith.constant 0 : index
    %c0_0 = arith.constant 0 : index
    %0 = vector.load %arg1[%c0, %c0_0] : memref<8x36xf32, #tpu.memory_space<vmem>>, vector<8x36xf32>
    %c0_1 = arith.constant 0 : index
    %c0_2 = arith.constant 0 : index
    %1 = vector.load %arg2[%c0_1, %c0_2] : memref<8x1xf32, #tpu.memory_space<vmem>>, vector<8x1xf32>
    %2 = vector.broadcast %1 : vector<8x1xf32> to vector<8x36xf32>
    %3 = arith.mulf %0, %2 : vector<8x36xf32>
    %cst = arith.constant dense<0.000000e+00> : vector<36xf32>
    %4 = vector.multi_reduction <add>, %3, %cst [0] : vector<8x36xf32> to vector<36xf32>
    %5 = vector.shape_cast %4 : vector<36xf32> to vector<1x36xf32>
    %6 = arith.mulf %5, %5 : vector<1x36xf32>
    %cst_3 = arith.constant dense<0.000000e+00> : vector<1xf32>
    %7 = vector.multi_reduction <add>, %6, %cst_3 [1] : vector<1x36xf32> to vector<1xf32>
    %8 = vector.shape_cast %7 : vector<1xf32> to vector<1x1xf32>
    %cst_4 = arith.constant 1.000000e-24 : f32
    %9 = vector.broadcast %cst_4 : f32 to vector<1x1xf32>
    %10 = arith.addf %8, %9 : vector<1x1xf32>
    %11 = math.rsqrt %10 : vector<1x1xf32>
    %12 = vector.broadcast %11 : vector<1x1xf32> to vector<1x36xf32>
    %13 = arith.mulf %5, %12 : vector<1x36xf32>
    %14 = vector.broadcast %13 : vector<1x36xf32> to vector<8x36xf32>
    %15 = arith.mulf %0, %14 : vector<8x36xf32>
    %cst_5 = arith.constant dense<0.000000e+00> : vector<8xf32>
    %16 = vector.multi_reduction <add>, %15, %cst_5 [1] : vector<8x36xf32> to vector<8xf32>
    %17 = vector.shape_cast %16 : vector<8xf32> to vector<8x1xf32>
    %18 = arith.mulf %17, %17 : vector<8x1xf32>
    %cst_6 = arith.constant dense<0.000000e+00> : vector<1xf32>
    %19 = vector.multi_reduction <add>, %18, %cst_6 [0] : vector<8x1xf32> to vector<1xf32>
    %20 = vector.shape_cast %19 : vector<1xf32> to vector<1x1xf32>
    %cst_7 = arith.constant 1.000000e-24 : f32
    %21 = vector.broadcast %cst_7 : f32 to vector<1x1xf32>
    %22 = arith.addf %20, %21 : vector<1x1xf32>
    %23 = math.rsqrt %22 : vector<1x1xf32>
    %24 = vector.broadcast %23 : vector<1x1xf32> to vector<8x1xf32>
    %25 = arith.mulf %17, %24 : vector<8x1xf32>
    %26 = arith.mulf %25, %17 : vector<8x1xf32>
    %cst_8 = arith.constant dense<0.000000e+00> : vector<1xf32>
    %27 = vector.multi_reduction <add>, %26, %cst_8 [0] : vector<8x1xf32> to vector<1xf32>
    %28 = vector.shape_cast %27 : vector<1xf32> to vector<1x1xf32>
    %cst_9 = arith.constant 1.000000e+00 : f32
    %29 = vector.broadcast %cst_9 : f32 to vector<1x1xf32>
    %30 = arith.divf %29, %28 : vector<1x1xf32>
    %c0_10 = arith.constant 0 : index
    %c0_11 = arith.constant 0 : index
    %31 = vector.load %arg6[%c0_10, %c0_11] : memref<1x1xf32, #tpu.memory_space<vmem>>, vector<1x1xf32>
    tpu.vector_store %arg6[%c0_10, %c0_11], %30 {strides = array<i32>} : memref<1x1xf32, #tpu.memory_space<vmem>>, vector<1x1xf32>,
    %c0_12 = arith.constant 0 : index
    %c0_13 = arith.constant 0 : index
    %32 = vector.load %arg4[%c0_12, %c0_13] : memref<8x1xf32, #tpu.memory_space<vmem>>, vector<8x1xf32>
    tpu.vector_store %arg4[%c0_12, %c0_13], %25 {strides = array<i32>} : memref<8x1xf32, #tpu.memory_space<vmem>>, vector<8x1xf32>,
    %c0_14 = arith.constant 0 : index
    %c0_15 = arith.constant 0 : index
    %33 = vector.load %arg5[%c0_14, %c0_15] : memref<1x36xf32, #tpu.memory_space<vmem>>, vector<1x36xf32>
    tpu.vector_store %arg5[%c0_14, %c0_15], %13 {strides = array<i32>} : memref<1x36xf32, #tpu.memory_space<vmem>>, vector<1x36xf32>,
    return
  }
  func.func @transform_0(%arg0: i32) -> (i32, i32) {
    %c0_i32 = arith.constant 0 : i32
    %c0_i32_0 = arith.constant 0 : i32
    %c0_i32_1 = arith.constant 0 : i32
    return %c0_i32, %c0_i32_0 : i32, i32
  }
  func.func @transform_1(%arg0: i32) -> (i32, i32) {
    %c0_i32 = arith.constant 0 : i32
    %c0_i32_0 = arith.constant 0 : i32
    %c0_i32_1 = arith.constant 0 : i32
    return %c0_i32, %c0_i32_0 : i32, i32
  }
  func.func @transform_2(%arg0: i32) -> (i32, i32) {
    %c0_i32 = arith.constant 0 : i32
    %c0_i32_0 = arith.constant 0 : i32
    %c0_i32_1 = arith.constant 0 : i32
    return %c0_i32, %c0_i32_0 : i32, i32
  }
  func.func @transform_3(%arg0: i32) -> (i32, i32) {
    %c0_i32 = arith.constant 0 : i32
    %c0_i32_0 = arith.constant 0 : i32
    %c0_i32_1 = arith.constant 0 : i32
    return %c0_i32, %c0_i32_0 : i32, i32
  }
  func.func @transform_4(%arg0: i32) -> (i32, i32) {
    %c0_i32 = arith.constant 0 : i32
    %c0_i32_0 = arith.constant 0 : i32
    %c0_i32_1 = arith.constant 0 : i32
    return %c0_i32, %c0_i32_0 : i32, i32
  }
  func.func @transform_5(%arg0: i32) -> (i32, i32) {
    %c0_i32 = arith.constant 0 : i32
    %c0_i32_0 = arith.constant 0 : i32
    %c0_i32_1 = arith.constant 0 : i32
    return %c0_i32, %c0_i32_0 : i32, i32
  }
}

module attributes {stable_mosaic.version = 11 : i64} {
  func.func @_conv_im2col_kernel(%arg0: i32, %arg1: memref<1x18x18x4xbf16, #tpu.memory_space<vmem>>, %arg2: memref<9x4x128xbf16, #tpu.memory_space<vmem>>, %arg3: memref<1x128xf32, #tpu.memory_space<vmem>>, %arg4: memref<1x1xf32, #tpu.memory_space<vmem>>, %arg5: memref<1x256x128xf32, #tpu.memory_space<vmem>>) attributes {dimension_semantics = [#tpu.dimension_semantics<parallel>], iteration_bounds = array<i64: 2>, scalar_prefetch = 0 : i64, scratch_operands = 0 : i64, tpu.core_type = #tpu.core_type<tc>, window_params = [{transform_indices = @transform_0, window_bounds = array<i64: 1, 18, 18, 4>}, {pipeline_mode = #tpu.pipeline_mode<synchronous>, transform_indices = @transform_1, window_bounds = array<i64: 9, 4, 128>}, {pipeline_mode = #tpu.pipeline_mode<synchronous>, transform_indices = @transform_2, window_bounds = array<i64: 1, 128>}, {pipeline_mode = #tpu.pipeline_mode<synchronous>, transform_indices = @transform_3, window_bounds = array<i64: 1, 1>}, {transform_indices = @transform_4, window_bounds = array<i64: 1, 256, 128>}]} {
    %c0 = arith.constant 0 : index
    %c0_0 = arith.constant 0 : index
    %c0_1 = arith.constant 0 : index
    %c0_2 = arith.constant 0 : index
    %0 = vector.load %arg1[%c0, %c0_0, %c0_1, %c0_2] : memref<1x18x18x4xbf16, #tpu.memory_space<vmem>>, vector<1x18x18x4xbf16>
    %1 = vector.shape_cast %0 : vector<1x18x18x4xbf16> to vector<18x18x4xbf16>
    %cst = arith.constant 0.000000e+00 : f32
    %2 = vector.broadcast %cst : f32 to vector<256x128xf32>
    %3 = vector.extract_strided_slice %1 {offsets = [0, 0, 0], sizes = [16, 16, 4], strides = [1, 1, 1]} : vector<18x18x4xbf16> to vector<16x16x4xbf16>
    %4 = vector.shape_cast %3 : vector<16x16x4xbf16> to vector<256x4xbf16>
    %c0_3 = arith.constant 0 : index
    %c0_4 = arith.constant 0 : index
    %c0_5 = arith.constant 0 : index
    %5 = vector.load %arg2[%c0_3, %c0_4, %c0_5] : memref<9x4x128xbf16, #tpu.memory_space<vmem>>, vector<1x4x128xbf16>
    %6 = vector.shape_cast %5 : vector<1x4x128xbf16> to vector<4x128xbf16>
    %cst_6 = arith.constant dense<0.000000e+00> : vector<256x128xf32>
    %7 = tpu.matmul %4, %6, %cst_6 {dimension_numbers = #tpu.dot_dimension_numbers<[1], [0], [0], [1], [0, 0, 1, 1], [], []>} : vector<256x4xbf16>, vector<4x128xbf16>, vector<256x128xf32> -> vector<256x128xf32>
    %8 = arith.addf %2, %7 : vector<256x128xf32>
    %9 = vector.extract_strided_slice %1 {offsets = [0, 1, 0], sizes = [16, 16, 4], strides = [1, 1, 1]} : vector<18x18x4xbf16> to vector<16x16x4xbf16>
    %10 = vector.shape_cast %9 : vector<16x16x4xbf16> to vector<256x4xbf16>
    %c1 = arith.constant 1 : index
    %c0_7 = arith.constant 0 : index
    %c0_8 = arith.constant 0 : index
    %11 = vector.load %arg2[%c1, %c0_7, %c0_8] : memref<9x4x128xbf16, #tpu.memory_space<vmem>>, vector<1x4x128xbf16>
    %12 = vector.shape_cast %11 : vector<1x4x128xbf16> to vector<4x128xbf16>
    %cst_9 = arith.constant dense<0.000000e+00> : vector<256x128xf32>
    %13 = tpu.matmul %10, %12, %cst_9 {dimension_numbers = #tpu.dot_dimension_numbers<[1], [0], [0], [1], [0, 0, 1, 1], [], []>} : vector<256x4xbf16>, vector<4x128xbf16>, vector<256x128xf32> -> vector<256x128xf32>
    %14 = arith.addf %8, %13 : vector<256x128xf32>
    %15 = vector.extract_strided_slice %1 {offsets = [0, 2, 0], sizes = [16, 16, 4], strides = [1, 1, 1]} : vector<18x18x4xbf16> to vector<16x16x4xbf16>
    %16 = vector.shape_cast %15 : vector<16x16x4xbf16> to vector<256x4xbf16>
    %c2 = arith.constant 2 : index
    %c0_10 = arith.constant 0 : index
    %c0_11 = arith.constant 0 : index
    %17 = vector.load %arg2[%c2, %c0_10, %c0_11] : memref<9x4x128xbf16, #tpu.memory_space<vmem>>, vector<1x4x128xbf16>
    %18 = vector.shape_cast %17 : vector<1x4x128xbf16> to vector<4x128xbf16>
    %cst_12 = arith.constant dense<0.000000e+00> : vector<256x128xf32>
    %19 = tpu.matmul %16, %18, %cst_12 {dimension_numbers = #tpu.dot_dimension_numbers<[1], [0], [0], [1], [0, 0, 1, 1], [], []>} : vector<256x4xbf16>, vector<4x128xbf16>, vector<256x128xf32> -> vector<256x128xf32>
    %20 = arith.addf %14, %19 : vector<256x128xf32>
    %21 = vector.extract_strided_slice %1 {offsets = [1, 0, 0], sizes = [16, 16, 4], strides = [1, 1, 1]} : vector<18x18x4xbf16> to vector<16x16x4xbf16>
    %22 = vector.shape_cast %21 : vector<16x16x4xbf16> to vector<256x4xbf16>
    %c3 = arith.constant 3 : index
    %c0_13 = arith.constant 0 : index
    %c0_14 = arith.constant 0 : index
    %23 = vector.load %arg2[%c3, %c0_13, %c0_14] : memref<9x4x128xbf16, #tpu.memory_space<vmem>>, vector<1x4x128xbf16>
    %24 = vector.shape_cast %23 : vector<1x4x128xbf16> to vector<4x128xbf16>
    %cst_15 = arith.constant dense<0.000000e+00> : vector<256x128xf32>
    %25 = tpu.matmul %22, %24, %cst_15 {dimension_numbers = #tpu.dot_dimension_numbers<[1], [0], [0], [1], [0, 0, 1, 1], [], []>} : vector<256x4xbf16>, vector<4x128xbf16>, vector<256x128xf32> -> vector<256x128xf32>
    %26 = arith.addf %20, %25 : vector<256x128xf32>
    %27 = vector.extract_strided_slice %1 {offsets = [1, 1, 0], sizes = [16, 16, 4], strides = [1, 1, 1]} : vector<18x18x4xbf16> to vector<16x16x4xbf16>
    %28 = vector.shape_cast %27 : vector<16x16x4xbf16> to vector<256x4xbf16>
    %c4 = arith.constant 4 : index
    %c0_16 = arith.constant 0 : index
    %c0_17 = arith.constant 0 : index
    %29 = vector.load %arg2[%c4, %c0_16, %c0_17] : memref<9x4x128xbf16, #tpu.memory_space<vmem>>, vector<1x4x128xbf16>
    %30 = vector.shape_cast %29 : vector<1x4x128xbf16> to vector<4x128xbf16>
    %cst_18 = arith.constant dense<0.000000e+00> : vector<256x128xf32>
    %31 = tpu.matmul %28, %30, %cst_18 {dimension_numbers = #tpu.dot_dimension_numbers<[1], [0], [0], [1], [0, 0, 1, 1], [], []>} : vector<256x4xbf16>, vector<4x128xbf16>, vector<256x128xf32> -> vector<256x128xf32>
    %32 = arith.addf %26, %31 : vector<256x128xf32>
    %33 = vector.extract_strided_slice %1 {offsets = [1, 2, 0], sizes = [16, 16, 4], strides = [1, 1, 1]} : vector<18x18x4xbf16> to vector<16x16x4xbf16>
    %34 = vector.shape_cast %33 : vector<16x16x4xbf16> to vector<256x4xbf16>
    %c5 = arith.constant 5 : index
    %c0_19 = arith.constant 0 : index
    %c0_20 = arith.constant 0 : index
    %35 = vector.load %arg2[%c5, %c0_19, %c0_20] : memref<9x4x128xbf16, #tpu.memory_space<vmem>>, vector<1x4x128xbf16>
    %36 = vector.shape_cast %35 : vector<1x4x128xbf16> to vector<4x128xbf16>
    %cst_21 = arith.constant dense<0.000000e+00> : vector<256x128xf32>
    %37 = tpu.matmul %34, %36, %cst_21 {dimension_numbers = #tpu.dot_dimension_numbers<[1], [0], [0], [1], [0, 0, 1, 1], [], []>} : vector<256x4xbf16>, vector<4x128xbf16>, vector<256x128xf32> -> vector<256x128xf32>
    %38 = arith.addf %32, %37 : vector<256x128xf32>
    %39 = vector.extract_strided_slice %1 {offsets = [2, 0, 0], sizes = [16, 16, 4], strides = [1, 1, 1]} : vector<18x18x4xbf16> to vector<16x16x4xbf16>
    %40 = vector.shape_cast %39 : vector<16x16x4xbf16> to vector<256x4xbf16>
    %c6 = arith.constant 6 : index
    %c0_22 = arith.constant 0 : index
    %c0_23 = arith.constant 0 : index
    %41 = vector.load %arg2[%c6, %c0_22, %c0_23] : memref<9x4x128xbf16, #tpu.memory_space<vmem>>, vector<1x4x128xbf16>
    %42 = vector.shape_cast %41 : vector<1x4x128xbf16> to vector<4x128xbf16>
    %cst_24 = arith.constant dense<0.000000e+00> : vector<256x128xf32>
    %43 = tpu.matmul %40, %42, %cst_24 {dimension_numbers = #tpu.dot_dimension_numbers<[1], [0], [0], [1], [0, 0, 1, 1], [], []>} : vector<256x4xbf16>, vector<4x128xbf16>, vector<256x128xf32> -> vector<256x128xf32>
    %44 = arith.addf %38, %43 : vector<256x128xf32>
    %45 = vector.extract_strided_slice %1 {offsets = [2, 1, 0], sizes = [16, 16, 4], strides = [1, 1, 1]} : vector<18x18x4xbf16> to vector<16x16x4xbf16>
    %46 = vector.shape_cast %45 : vector<16x16x4xbf16> to vector<256x4xbf16>
    %c7 = arith.constant 7 : index
    %c0_25 = arith.constant 0 : index
    %c0_26 = arith.constant 0 : index
    %47 = vector.load %arg2[%c7, %c0_25, %c0_26] : memref<9x4x128xbf16, #tpu.memory_space<vmem>>, vector<1x4x128xbf16>
    %48 = vector.shape_cast %47 : vector<1x4x128xbf16> to vector<4x128xbf16>
    %cst_27 = arith.constant dense<0.000000e+00> : vector<256x128xf32>
    %49 = tpu.matmul %46, %48, %cst_27 {dimension_numbers = #tpu.dot_dimension_numbers<[1], [0], [0], [1], [0, 0, 1, 1], [], []>} : vector<256x4xbf16>, vector<4x128xbf16>, vector<256x128xf32> -> vector<256x128xf32>
    %50 = arith.addf %44, %49 : vector<256x128xf32>
    %51 = vector.extract_strided_slice %1 {offsets = [2, 2, 0], sizes = [16, 16, 4], strides = [1, 1, 1]} : vector<18x18x4xbf16> to vector<16x16x4xbf16>
    %52 = vector.shape_cast %51 : vector<16x16x4xbf16> to vector<256x4xbf16>
    %c8 = arith.constant 8 : index
    %c0_28 = arith.constant 0 : index
    %c0_29 = arith.constant 0 : index
    %53 = vector.load %arg2[%c8, %c0_28, %c0_29] : memref<9x4x128xbf16, #tpu.memory_space<vmem>>, vector<1x4x128xbf16>
    %54 = vector.shape_cast %53 : vector<1x4x128xbf16> to vector<4x128xbf16>
    %cst_30 = arith.constant dense<0.000000e+00> : vector<256x128xf32>
    %55 = tpu.matmul %52, %54, %cst_30 {dimension_numbers = #tpu.dot_dimension_numbers<[1], [0], [0], [1], [0, 0, 1, 1], [], []>} : vector<256x4xbf16>, vector<4x128xbf16>, vector<256x128xf32> -> vector<256x128xf32>
    %56 = arith.addf %50, %55 : vector<256x128xf32>
    %c0_31 = arith.constant 0 : index
    %c0_32 = arith.constant 0 : index
    %57 = vector.load %arg4[%c0_31, %c0_32] : memref<1x1xf32, #tpu.memory_space<vmem>>, vector<1x1xf32>
    %58 = vector.broadcast %57 : vector<1x1xf32> to vector<256x128xf32>
    %59 = arith.mulf %56, %58 : vector<256x128xf32>
    %c0_33 = arith.constant 0 : index
    %c0_34 = arith.constant 0 : index
    %60 = vector.load %arg3[%c0_33, %c0_34] : memref<1x128xf32, #tpu.memory_space<vmem>>, vector<1x128xf32>
    %61 = vector.broadcast %60 : vector<1x128xf32> to vector<256x128xf32>
    %62 = arith.addf %59, %61 : vector<256x128xf32>
    %c0_35 = arith.constant 0 : index
    %c0_36 = arith.constant 0 : index
    %c0_37 = arith.constant 0 : index
    %63 = vector.load %arg5[%c0_35, %c0_36, %c0_37] : memref<1x256x128xf32, #tpu.memory_space<vmem>>, vector<1x256x128xf32>
    %64 = vector.shape_cast %63 : vector<1x256x128xf32> to vector<256x128xf32>
    %65 = vector.shape_cast %62 : vector<256x128xf32> to vector<1x256x128xf32>
    tpu.vector_store %arg5[%c0_35, %c0_36, %c0_37], %65 {strides = array<i32>} : memref<1x256x128xf32, #tpu.memory_space<vmem>>, vector<1x256x128xf32>,
    return
  }
  func.func @transform_0(%arg0: i32) -> (i32, i32, i32, i32) {
    %c0_i32 = arith.constant 0 : i32
    %c0_i32_0 = arith.constant 0 : i32
    %c0_i32_1 = arith.constant 0 : i32
    %c0_i32_2 = arith.constant 0 : i32
    return %arg0, %c0_i32, %c0_i32_0, %c0_i32_1 : i32, i32, i32, i32
  }
  func.func @transform_1(%arg0: i32) -> (i32, i32, i32) {
    %c0_i32 = arith.constant 0 : i32
    %c0_i32_0 = arith.constant 0 : i32
    %c0_i32_1 = arith.constant 0 : i32
    %c0_i32_2 = arith.constant 0 : i32
    return %c0_i32, %c0_i32_0, %c0_i32_1 : i32, i32, i32
  }
  func.func @transform_2(%arg0: i32) -> (i32, i32) {
    %c0_i32 = arith.constant 0 : i32
    %c0_i32_0 = arith.constant 0 : i32
    %c0_i32_1 = arith.constant 0 : i32
    return %c0_i32, %c0_i32_0 : i32, i32
  }
  func.func @transform_3(%arg0: i32) -> (i32, i32) {
    %c0_i32 = arith.constant 0 : i32
    %c0_i32_0 = arith.constant 0 : i32
    %c0_i32_1 = arith.constant 0 : i32
    return %c0_i32, %c0_i32_0 : i32, i32
  }
  func.func @transform_4(%arg0: i32) -> (i32, i32, i32) {
    %c0_i32 = arith.constant 0 : i32
    %c0_i32_0 = arith.constant 0 : i32
    %c0_i32_1 = arith.constant 0 : i32
    return %arg0, %c0_i32, %c0_i32_0 : i32, i32, i32
  }
}

</mosaic_0001>

<bundles_post_ra>
// kernel: spectral_norm_conv2d.2
= control target key start
LH: loop header
LB: loop body
LE: loop exit
PB: predicated region body
PF: predicated region fallthrough
CT: control target
= control target key end

     0   :  { %11 = vsyncpa [#allocation3], 0  ;;  %s230_s0 = inlined_call_operand.vmem [shape: f32[8,36], index: 0, kind: input, shape index: {}]   ;;  %s231_s1 = inlined_call_operand.vmem [shape: f32[8,1], index: 1, kind: input, shape index: {}]   ;;  %s232_s2 = inlined_call_operand.vmem [shape: f32[1,36], index: 2, kind: input, shape index: {}]   ;;  %s233_s3 = inlined_call_operand.vmem [shape: f32[8,1], index: 3, kind: output, shape index: {0}]   ;;  %s234_s4 = inlined_call_operand.hbm [shape: f32[1,36], index: 4, kind: output, shape index: {1}]   ;;  %s235_s5 = inlined_call_operand.hbm [shape: f32[1,1], index: 5, kind: output, shape index: {2}]  }
   0x1   :  { %v20_v0 = vld [vmem:[%s231_s1] sm:$0xff] }
   0x2   :  { %12 = vsyncpa [#allocation5], 0  ;;  %v161_v1 = vmov 0   ;;  %v19_v2 = vld [vmem:[%s230_s0] sm:$0xff]  ;;  %vm27_vm0 = vcmask 293888   ;;  %vm69_vm1 = vcmask 286720  }
   0x3   :  { %106 = vset.pattern.permute.xlu0 %v161_v1  ;;  %s162_s0 = smov [#allocation2]  }
   0x4   :  { %23 = vperm.xlu0 %106, %v20_v0   ;;  %s79_s1 = sshll.u32 %s162_s0, 4  ;;  %s80_s1 = int_to_ptr.vmem [resolvable:$true] %s79_s1 }
   0x5   :  { %s113_s21 = scalar_lea.vmem %s80_s1, 16  ;;  %s117_s22 = scalar_lea.vmem %s80_s1, 32 }
   0x6   :  { %p114_p0 = scmp.ne.s32.totalorder %s80_s1, %s113_s21  ;;  %p118_p1 = scmp.lt.s32.totalorder %s80_s1, %s80_s1 }
   0x7   :  { %p119_p2 = scmp.lt.s32.totalorder %s117_s22, %s113_s21 }
   0x9   :  { %p120_p3 = por %p119_p2, %p118_p1 }
   0xb   :  { %p121_p4 = pnand %p120_p3, %p114_p0 }
  0x83   :  { %v24_v3 = vpop.permute.xlu0 %23 }
  0x84   :  { %v26_v4 = vmul.f32 %v24_v3, %v19_v2 }
  0x86   :  { %v28_v5 = vsel %vm27_vm0, %v26_v4, 0.0 }
  0x87   :  { %v29_v6 = vrot.slane %v28_v5, 4 }
  0x89   :  { %v30_v7 = vadd.f32 %v29_v6, %v28_v5 }
  0x8b   :  { %v31_v8 = vrot.slane %v30_v7, 2 }
  0x8d   :  { %v32_v9 = vadd.f32 %v31_v8, %v30_v7 }
  0x8f   :  { %v33_v10 = vrot.slane %v32_v9, 1 }
  0x91   :  { %v34_v11 = vadd.f32 %v33_v10, %v32_v9 }
  0x93   :  { %v35_v12 = vmul.f32 %v34_v11, %v34_v11 }
  0x95   :  { %v36_v13 = vsel %vm27_vm0, %v35_v12, 0.0 }
  0x96   :  { %37 = vadd.xlane.f32.xlu0 %v36_v13 }
 0x123   :  { %v38_v14 = vpop.xlane.xlu0 %37 }
 0x124   :  { %v39_v15 = vadd.f32 1e-24, %v38_v14 }
 0x126   :  { %107 = vrsqrt.f32 %v39_v15 }
 0x130   :  { %v108_v16 = vpop.eup %107 }
 0x131   :  { %v41_v17 = vmul.f32 %v108_v16, %v34_v11 }
 0x133   :  { %v42_v18 = vmul.f32 %v41_v17, %v19_v2  ;;  %70 = vst.msk [vmem:[#allocation2] sm:$0x1] %vm69_vm1, %v41_v17 }
 0x135   :  { %v43_v19 = vsel %vm27_vm0, %v42_v18, 0.0 }
 0x136   :  { %44 = vadd.xlane.f32.xlu1 %v43_v19 }
 0x137   :  { %124 = shalt.err (!%p121_p4)
}
 0x138   :  { %s125_s25 = scalar_lea.hbm %s234_s4, 16 }
 0x139   :  { %p126_p5 = scmp.ne.s32.totalorder %s234_s4, %s125_s25  ;;  %p129_p6 = scmp.lt.u32.totalorder %s125_s25, %s234_s4 }
 0x13b   :  { %p131_p7 = pnand %p129_p6, %p126_p5 }
 0x13d   :  { %134 = shalt.err (!%p131_p7)
}
 0x13e   :  { %82 = dma.vmem_to_hbm [thread:$0]  %s80_s1, 16, %s234_s4, [#allocation3]   ;;  %vm67_vm2 = vcmask 7168   ;;  %vm65_vm3 = vcmask 0  }
 0x13f   :  { %s163_s4 = smov [#allocation4]  }
 0x140   :  { %s89_s9 = sshll.u32 %s163_s4, 4  ;;  %s90_s9 = int_to_ptr.vmem [resolvable:$true] %s89_s9 }
 0x141   :  { %s135_s10 = scalar_lea.vmem %s90_s9, 16  ;;  %s139_s11 = scalar_lea.vmem %s90_s9, 32 }
 0x142   :  { %p136_p8 = scmp.ne.s32.totalorder %s90_s9, %s135_s10  ;;  %p140_p9 = scmp.lt.s32.totalorder %s90_s9, %s90_s9 }
 0x143   :  { %p141_p10 = scmp.lt.s32.totalorder %s139_s11, %s135_s10 }
 0x145   :  { %p142_p11 = por %p141_p10, %p140_p9 }
 0x147   :  { %p143_p12 = pnand %p142_p11, %p136_p8 }
 0x1c3   :  { %v45_v20 = vpop.xlane.xlu1 %44 }
 0x1c4   :  { %v46_v21 = vmul.f32 %v45_v20, %v45_v20 }
 0x1c6   :  { %v47_v22 = vrot.slane %v46_v21, 4 }
 0x1c8   :  { %v48_v23 = vadd.f32 %v47_v22, %v46_v21 }
 0x1ca   :  { %v49_v24 = vrot.slane %v48_v23, 2 }
 0x1cc   :  { %v50_v25 = vadd.f32 %v49_v24, %v48_v23 }
 0x1ce   :  { %v51_v26 = vrot.slane %v50_v25, 1 }
 0x1d0   :  { %v52_v27 = vadd.f32 %v51_v26, %v50_v25 }
 0x1d2   :  { %v53_v28 = vadd.f32 1e-24, %v52_v27 }
 0x1d4   :  { %109 = vrsqrt.f32 %v53_v28 }
 0x1de   :  { %v110_v29 = vpop.eup %109 }
 0x1df   :  { %v55_v30 = vmul.f32 %v110_v29, %v45_v20 }
 0x1e1   :  { %v56_v31 = vmul.f32 %v55_v30, %v45_v20  ;;  %68 = vst.msk [vmem:[%s233_s3] sm:$0xff] %vm67_vm2, %v55_v30 }
 0x1e3   :  { %v57_v32 = vrot.slane %v56_v31, 4 }
 0x1e5   :  { %v58_v33 = vadd.f32 %v57_v32, %v56_v31 }
 0x1e7   :  { %v59_v34 = vrot.slane %v58_v33, 2 }
 0x1e9   :  { %v60_v35 = vadd.f32 %v59_v34, %v58_v33 }
 0x1eb   :  { %v61_v36 = vrot.slane %v60_v35, 1 }
 0x1ed   :  { %v62_v37 = vadd.f32 %v61_v36, %v60_v35 }
 0x1ef   :  { %111 = vrcp.f32 %v62_v37 }
 0x1f9   :  { %v112_v38 = vpop.eup %111 }
 0x1fa   :  { %66 = vst.msk [vmem:[#allocation4] sm:$0x1] %vm65_vm3, %v112_v38 }
 0x1fb   :  { %146 = shalt.err (!%p143_p12)
}
 0x1fc   :  { %s147_s13 = scalar_lea.hbm %s235_s5, 16 }
 0x1fd   :  { %p148_p13 = scmp.ne.s32.totalorder %s235_s5, %s147_s13  ;;  %p151_p0 = scmp.lt.u32.totalorder %s147_s13, %s235_s5 }
 0x1ff   :  { %p153_p1 = pnand %p151_p0, %p148_p13 }
 0x201   :  { %156 = shalt.err (!%p153_p1)
}
 0x202   :  { %92 = dma.vmem_to_hbm [thread:$0]  %s90_s9, 16, %s235_s5, [#allocation5]  }
 0x203   :  { %157 = dma.done.wait [#allocation3], 16  }
 0x204   :  { %158 = vsyncadd [#allocation3], 4294967280 }
 0x205   :  { %159 = dma.done.wait [#allocation5], 16  }
 0x206   :  { %160 = vsyncadd [#allocation5], 4294967280 }
 0x207   :  { %101 = vsyncpa [#allocation3], 1 }
 0x208   :  { %102 = vsyncpa [#allocation5], 1 }

// kernel: spectral_norm_conv2d.3
= control target key start
LH: loop header
LB: loop body
LE: loop exit
PB: predicated region body
PF: predicated region fallthrough
CT: control target
= control target key end

     0   :  { %s4118_s17 = smov 0   ;;  %s5205_s0 = inlined_call_operand.vmem [shape: bf16[2,18,18,4], index: 0, kind: input, shape index: {}]   ;;  %s5206_s1 = inlined_call_operand.vmem [shape: bf16[9,4,128], index: 1, kind: input, shape index: {}]   ;;  %s5207_s2 = inlined_call_operand.vmem [shape: f32[1,128], index: 2, kind: input, shape index: {}]   ;;  %s5208_s3 = inlined_call_operand.<no memory space> [shape: f32[1,1], index: 3, kind: input, shape index: {}]   ;;  %s5209_s4 = inlined_call_operand.vmem [shape: f32[2,256,128], index: 4, kind: output, shape index: {}]  }
   0x1   :  { %v9_v0 = vstv %s5208_s3 }
   0x2   :  { %10 = vst [vmem:[#allocation2] sm:$0x1] %v9_v0 }
   0x3 LB: > { %s3084_s18 = sadd.s32 4294967295, %s4087_s17   ;;  %p3088_p0 = scmp.ge.s32.totalorder %s4087_s17, 1  ;;  %s4087_s17 = sphi %s4118_s17, %s16_s17  }
   0x4   : > { %p164_p1 = scmp.lt.s32.totalorder %s4087_s17, 3 }
   0x6   : > { %p165_p2 = pnand %p3088_p0, %p164_p1 }
   0x8   : > { %168 = sbr.rel (%p165_p2) target bundleno = 555 (0x22b), region = 36 }
   0xf   : > { %v3092_v1 = vld [vmem:[%s5206_s1 + $0x2] sm:$0x3]  ;;  %vm742_vm0 = vcmask 1041408   ;;  %v3224_v2 = vld [vmem:[%s5206_s1 + $0x8] sm:$0x3]  ;;  %p190_p3 = scmp.lt.s32.totalorder %s3084_s18, 1 }
  0x10   : > { %4038 = vmatprep.subr.msk.bf16.mxu1 %vm742_vm0, %v3092_v1  ;;  %4042 = vmatprep.subr.msk.bf16.mxu0 %vm742_vm0, %v3224_v2  ;;  %v744_v3 = vsel %vm742_vm0, %v3092_v1, 0  ;;  %v4136_v4 = vsel %vm742_vm0, %v3224_v2, 0  ;;  %v255_v5 = vld [vmem:[%s5206_s1] sm:$0x3]  ;;  %v3243_v6 = vld [vmem:[%s5206_s1 + $0xa] sm:$0x3] }
  0x11   : > { %5241 = vst [vmem:[#allocation3_spill] sm:$0xff] %v4136_v4  ;;  %3475 = vmatpush3.bf16.msra.mxu1 %v744_v3  ;;  %3611 = vmatpush3.bf16.msra.mxu0 %v4136_v4  ;;  %s5288_s18 = smov (!%p190_p3, %s3084_s18), 1  ;;  %vm256_vm1 = vsmask.f32 3328  ;;  %vm257_vm2 = vsmask.f32 7440 }
  0x12   : > { %4039 = vmatprep.subr.msk.bf16.mxu1 %vm742_vm0, %v255_v5  ;;  %4044 = vmatprep.subr.msk.bf16.mxu0 %vm742_vm0, %v3243_v6  ;;  %s4048_s26 = smul.u32 216, %s5288_s18  ;;  %v4156_v7 = vsel %vm742_vm0, %v255_v5, 0  ;;  %v4159_v8 = vsel %vm742_vm0, %v3243_v6, 0  ;;  %v4164_v9 = vld [vmem:[%s5206_s1 + $0xc] sm:$0x3]  ;;  %vm693_vm3 = vcmask 31744   ;;  %vm4200_vm4 = vmor %vm256_vm1, %vm257_vm2 }
  0x13   : > { %v4188_v21 = vsel %vm742_vm0, %v4164_v9, 0  ;;  %vm1215_vm5 = vcmask 1042432   ;;  %vm1216_vm6 = vcmask 1046532   ;;  %s3320_s16 = sshll.u32 %s5288_s18, 8 }
  0x14   : > { %s4153_s29 = scalar_lea.vmem %s5205_s0, %s4048_s26  ;;  %vm4381_vm7 = vmor %vm1215_vm5, %vm1216_vm6  ;;  %s5101_s22 = scalar_lea.vmem %s5209_s4, %s3320_s16 }
  0x15   : > { %v4167_v10 = vld [vmem:[%s4153_s29] sm:$0xf]  ;;  %v4170_v11 = vld [vmem:[%s4153_s29 + $0x4] sm:$0xf]  ;;  %v203_v12 = vld [vmem:[%s4153_s29 + $0x8] sm:$0x1] }
  0x16   : > { %v260_v13 = vshrl.u32 %v4167_v10, 16  ;;  %v263_v14 = vshll.u32 %v4167_v10, 16  ;;  %v269_v15 = vshll.u32 %v4170_v11, 16  ;;  %v273_v16 = vshrl.u32 %v4170_v11, 16  ;;  %v4178_v17 = vld [vmem:[%s4153_s29 + $0xc] sm:$0xf] }
  0x17   : > { %v279_v18 = vshll.u32 %v203_v12, 16  ;;  %v4181_v19 = vld [vmem:[%s4153_s29 + $0x10] sm:$0xf]  ;;  %v4184_v20 = vld [vmem:[%s4153_s29 + $0x14] sm:$0x1]  ;;  %v284_v27 = vshrl.u32 %v4178_v17, 16 }
  0x18   : > { %v262_v22 = vrot.slane %v260_v13, 4  ;;  %v265_v23 = vrot.slane %v263_v14, 5  ;;  %v271_v24 = vrot.slane %v269_v15, 5  ;;  %v275_v25 = vrot.slane %v273_v16, 4  ;;  %v4196_v34 = vld [vmem:[%s4153_s29 + $0x18] sm:$0xf] }
  0x19   : > { %v281_v26 = vrot.slane %v279_v18, 5  ;;  %v287_v28 = vshll.u32 %v4178_v17, 16  ;;  %v293_v29 = vshll.u32 %v4181_v19, 16  ;;  %v297_v32 = vshrl.u32 %v4181_v19, 16  ;;  %v4209_v40 = vld [vmem:[%s4153_s29 + $0x1c] sm:$0xf] }
  0x1a   : > { %v266_v30 = vor.u32 %v265_v23, %v262_v22  ;;  %v276_v31 = vor.u32 %v275_v25, %v271_v24  ;;  %v303_v33 = vshll.u32 %v4184_v20, 16  ;;  %v286_v36 = vrot.slane %v284_v27, 4  ;;  %v4213_v47 = vld [vmem:[%s4153_s29 + $0x20] sm:$0x1]  ;;  %v4223_v58 = vld [vmem:[%s4153_s29 + $0x24] sm:$0xf] }
  0x1b   : > { %v289_v37 = vrot.slane %v287_v28, 5  ;;  %v295_v38 = vrot.slane %v293_v29, 5  ;;  %v4206_v39 = vcombine.low %v4178_v17, %v4181_v19  ;;  %v299_v43 = vrot.slane %v297_v32, 4  ;;  %v4228_v63 = vld [vmem:[%s4153_s29 + $0x28] sm:$0xf] }
  0x1c   : > { %v267_v41 = vrot.slane %v266_v30, 4  ;;  %v277_v42 = vrot.slane %v276_v31, 4  ;;  %v305_v44 = vrot.slane %v303_v33, 5  ;;  %v1230_v46 = vrot.slane %v4184_v20, 5  ;;  %v4236_v5 = vld [vmem:[%s4153_s29 + $0x2c] sm:$0x1] }
  0x1d   : > { %v290_v45 = vor.u32 %v289_v37, %v286_v36  ;;  %v308_v48 = vshrl.u32 %v4196_v34, 16  ;;  %v311_v49 = vshll.u32 %v4196_v34, 16  ;;  %v300_v52 = vor.u32 %v299_v43, %v295_v38  ;;  %v4242_v15 = vld [vmem:[%s4153_s29 + $0x30] sm:$0xf]  ;;  %v4254_v29 = vld [vmem:[%s4153_s29 + $0x34] sm:$0xf] }
  0x1e   : > { %v272_v50 = vsel %vm4200_vm4, %v267_v41, %v271_v24  ;;  %v282_v51 = vsel %vm4200_vm4, %v277_v42, %v281_v26  ;;  %v317_v53 = vshll.u32 %v4209_v40, 16  ;;  %v321_v61 = vshrl.u32 %v4209_v40, 16  ;;  %v4249_v24 = vld [vmem:[%s5206_s1 + $0x4] sm:$0x3]  ;;  %v4261_v33 = vld [vmem:[%s4153_s29 + $0x38] sm:$0x1] }
  0x1f   : > { %v3093_v54 = vcombine.low %v272_v50, %v282_v51  ;;  %v291_v55 = vrot.slane %v290_v45, 4  ;;  %v310_v56 = vrot.slane %v308_v48, 4  ;;  %v313_v57 = vrot.slane %v311_v49, 5  ;;  %v4269_v49 = vld [vmem:[%s4153_s29 + $0x3c] sm:$0xf] }
  0x20   : > { %v301_v59 = vrot.slane %v300_v52, 4  ;;  %v319_v60 = vrot.slane %v317_v53, 5  ;;  %v327_v62 = vshll.u32 %v4213_v47, 16  ;;  %v1234_v2 = vrot.slane %v4209_v40, 5  ;;  %v4277_v53 = vld [vmem:[%s4153_s29 + $0x40] sm:$0xf] }
  0x21   : > { %3476 = vmatprep.mubr.msk.bf16.mxu1 %vm693_vm3, %v3093_v54  ;;  %v296_v0 = vsel %vm4200_vm4, %v291_v55, %v295_v38  ;;  %v314_v1 = vor.u32 %v313_v57, %v310_v56  ;;  %v1237_v3 = vrot.slane %v4213_v47, 5  ;;  %v323_v12 = vrot.slane %v321_v61, 4 }
  0x22   : > { %v306_v6 = vsel %vm4200_vm4, %v301_v59, %v305_v44  ;;  %v329_v13 = vrot.slane %v327_v62, 5  ;;  %v332_v14 = vshrl.u32 %v4223_v58, 16  ;;  %v335_v22 = vshll.u32 %v4223_v58, 16 }
  0x23   : > { %v3094_v16 = vcombine.low %v296_v0, %v306_v6  ;;  %v315_v18 = vrot.slane %v314_v1, 4  ;;  %v341_v23 = vshll.u32 %v4228_v63, 16  ;;  %v324_v25 = vor.u32 %v323_v12, %v319_v60  ;;  %v4289_v6 = vld [vmem:[%s4153_s29 + $0x44] sm:$0x1] }
  0x24   : > { %v334_v26 = vrot.slane %v332_v14, 4  ;;  %v345_v27 = vshrl.u32 %v4228_v63, 16  ;;  %v351_v28 = vshll.u32 %v4236_v5, 16  ;;  %v337_v31 = vrot.slane %v335_v22, 5  ;;  %v4294_v14 = vld [vmem:[%s4153_s29 + $0x48] sm:$0xf] }
  0x25   : > { %3612 = vmatprep.mubr.msk.bf16.mxu0 %vm693_vm3, %v3094_v16  ;;  %3477 = vmatmul.mubr.msk.bf16.vlgmr.msra.gmra.mrb[0].mxu1 %vm693_vm3, %v3094_v16  ;;  %v320_v30 = vsel %vm4200_vm4, %v315_v18, %v319_v60  ;;  %v343_v32 = vrot.slane %v341_v23, 5  ;;  %v356_v36 = vshrl.u32 %v4242_v15, 16  ;;  %v325_v37 = vrot.slane %v324_v25, 4  ;;  %v4301_v25 = vld [vmem:[%s4153_s29 + $0x4c] sm:$0xf] }
  0x26   : > { %3509 = vmatpush3.bf16.msra.mxu1 %v4156_v7  ;;  %v347_v38 = vrot.slane %v345_v27, 4  ;;  %v353_v41 = vrot.slane %v351_v28, 5  ;;  %v359_v42 = vshll.u32 %v4242_v15, 16  ;;  %v338_v43 = vor.u32 %v337_v31, %v334_v26 }
  0x27   : > { %v358_v44 = vrot.slane %v356_v36, 4  ;;  %v365_v45 = vshll.u32 %v4254_v29, 16  ;;  %v369_v48 = vshrl.u32 %v4254_v29, 16  ;;  %4040 = vmatprep.subr.msk.bf16.mxu1 %vm742_vm0, %v4249_v24  ;;  %v330_v50 = vsel %vm4200_vm4, %v325_v37, %v329_v13 }
  0x28   : > { %v348_v7 = vor.u32 %v347_v38, %v343_v32  ;;  %v361_v51 = vrot.slane %v359_v42, 5  ;;  %v375_v52 = vshll.u32 %v4261_v33, 16  ;;  %v4279_v54 = vcombine.low %v320_v30, %v330_v50 }
  0x29   : > { %v339_v55 = vrot.slane %v338_v43, 4  ;;  %v367_v56 = vrot.slane %v365_v45, 5  ;;  %v371_v57 = vrot.slane %v369_v48, 4  ;;  %v380_v62 = vshrl.u32 %v4269_v49, 16  ;;  %v4323_v43 = vld [vmem:[%s4153_s29 + $0x54] sm:$0xf] }
  0x2a   : > { %5244 = vst [vmem:[#allocation4_spill] sm:$0xff] %v4279_v54  ;;  %v349_v59 = vrot.slane %v348_v7, 4  ;;  %v362_v60 = vor.u32 %v361_v51, %v358_v44  ;;  %v377_v61 = vrot.slane %v375_v52, 5  ;;  %3613 = vmatmul.mubr.msk.bf16.vlgmr.msra.gmra.mrb[0].mxu0 %vm693_vm3, %v4279_v54  ;;  %3480 = vmatprep.mubr.msk.bf16.mxu1 %vm693_vm3, %v4279_v54  ;;  %v383_v12 = vshll.u32 %v4269_v49, 16  ;;  %5246 = vst [vmem:[#allocation6_spill] sm:$0xff] %v4323_v43 }
  0x2b   : > { %v344_v0 = vsel %vm4200_vm4, %v339_v55, %v343_v32  ;;  %v372_v1 = vor.u32 %v371_v57, %v367_v56  ;;  %v389_v13 = vshll.u32 %v4277_v53, 16  ;;  %3645 = vmatpush3.bf16.msra.mxu0 %v4159_v8  ;;  %v382_v22 = vrot.slane %v380_v62, 4  ;;  %v4328_v7 = vld [vmem:[%s4153_s29 + $0x58] sm:$0xf] }
  0x2c   : > { %v354_v16 = vsel %vm4200_vm4, %v349_v59, %v353_v41  ;;  %v363_v18 = vrot.slane %v362_v60, 4  ;;  %v393_v23 = vshrl.u32 %v4277_v53, 16  ;;  %v385_v28 = vrot.slane %v383_v12, 5  ;;  %4045 = vmatprep.subr.msk.bf16.mxu0 %vm742_vm0, %v4164_v9  ;;  %v4318_v9 = vld [vmem:[%s4153_s29 + $0x50] sm:$0x1] }
  0x2d   : > { %v4303_v26 = vcombine.low %v344_v0, %v354_v16  ;;  %v373_v27 = vrot.slane %v372_v1, 4  ;;  %v391_v30 = vrot.slane %v389_v13, 5  ;;  %v399_v32 = vshll.u32 %v4289_v6, 16  ;;  %v4341_v12 = vld [vmem:[%s4153_s29 + $0x5c] sm:$0x1] }
  0x2e   : > { %v368_v8 = vsel %vm4200_vm4, %v363_v18, %v367_v56  ;;  %v395_v31 = vrot.slane %v393_v23, 4  ;;  %v404_v36 = vshrl.u32 %v4294_v14, 16  ;;  %v386_v38 = vor.u32 %v385_v28, %v382_v22  ;;  %v4345_v16 = vld [vmem:[%s4153_s29 + $0x60] sm:$0xf]  ;;  %v4350_v28 = vld [vmem:[%s4153_s29 + $0x64] sm:$0xf] }
  0x2f   : > { %5245 = vst [vmem:[#allocation5_spill] sm:$0xff] %v4303_v26  ;;  %3616 = vmatprep.mubr.msk.bf16.mxu0 %vm693_vm3, %v4303_v26  ;;  %3481 = vmatmul.mubr.msk.bf16.gmra.mrb[4].mxu1 %vm693_vm3, %v4303_v26  ;;  %v378_v37 = vsel %vm4200_vm4, %v373_v27, %v377_v61  ;;  %v407_v41 = vshll.u32 %v4294_v14, 16  ;;  %v413_v42 = vshll.u32 %v4301_v25, 16  ;;  %v401_v48 = vrot.slane %v399_v32, 5  ;;  %v4562_v26 = vld [vmem:[%s4153_s29 + $0xa8] sm:$0xf] }
  0x30   : > { %v4325_v44 = vcombine.low %v368_v8, %v378_v37  ;;  %v396_v45 = vor.u32 %v395_v31, %v391_v30  ;;  %v406_v50 = vrot.slane %v404_v36, 4  ;;  %v387_v51 = vrot.slane %v386_v38, 4 }
  0x31   : > { %v409_v52 = vrot.slane %v407_v41, 5  ;;  %v415_v55 = vrot.slane %v413_v42, 5  ;;  %v417_v56 = vshrl.u32 %v4301_v25, 16  ;;  %v423_v59 = vshll.u32 %v4318_v9, 16 }
  0x32   : > { %5247 = vst [vmem:[#allocation7_spill] sm:$0xff] %v4325_v44  ;;  %3484 = vmatprep.mubr.msk.bf16.mxu1 %vm693_vm3, %v4325_v44  ;;  %v397_v57 = vrot.slane %v396_v45, 4  ;;  %v428_v60 = vshrl.u32 %v4323_v43, 16  ;;  %v431_v61 = vshll.u32 %v4323_v43, 16  ;;  %3617 = vmatmul.mubr.msk.bf16.gmra.mrb[4].mxu0 %vm693_vm3, %v4325_v44  ;;  %v392_v62 = vsel %vm4200_vm4, %v387_v51, %v391_v30 }
  0x33   : > { %v410_v0 = vor.u32 %v409_v52, %v406_v50  ;;  %v419_v1 = vrot.slane %v417_v56, 4  ;;  %v437_v13 = vshll.u32 %v4328_v7, 16  ;;  %v425_v22 = vrot.slane %v423_v59, 5 }
  0x34   : > { %v402_v18 = vsel %vm4200_vm4, %v397_v57, %v401_v48  ;;  %v430_v23 = vrot.slane %v428_v60, 4  ;;  %v433_v27 = vrot.slane %v431_v61, 5  ;;  %v441_v37 = vshrl.u32 %v4328_v7, 16  ;;  %v4364_v48 = vld [vmem:[%s4153_s29 + $0x68] sm:$0x1] }
  0x35   : > { %v4352_v8 = vcombine.low %v392_v62, %v402_v18  ;;  %v411_v30 = vrot.slane %v410_v0, 4  ;;  %v420_v31 = vor.u32 %v419_v1, %v415_v55  ;;  %v439_v32 = vrot.slane %v437_v13, 5 }
  0x36   : > { %v434_v36 = vor.u32 %v433_v27, %v430_v23  ;;  %v447_v38 = vshll.u32 %v4341_v12, 16  ;;  %v452_v41 = vshrl.u32 %v4345_v16, 16  ;;  %v455_v50 = vshll.u32 %v4345_v16, 16 }
  0x37   : > { %5248 = vst [vmem:[#allocation8_spill] sm:$0xff] %v4352_v8  ;;  %3620 = vmatprep.mubr.msk.bf16.mxu0 %vm693_vm3, %v4352_v8  ;;  %3485 = vmatmul.mubr.msk.bf16.gmra.mrb[8].mxu1 %vm693_vm3, %v4352_v8  ;;  %v416_v42 = vsel %vm4200_vm4, %v411_v30, %v415_v55  ;;  %v421_v45 = vrot.slane %v420_v31, 4  ;;  %v461_v51 = vshll.u32 %v4350_v28, 16  ;;  %v443_v56 = vrot.slane %v441_v37, 4  ;;  %v4372_v55 = vld [vmem:[%s4153_s29 + $0x6c] sm:$0xf] }
  0x38   : > { %v435_v52 = vrot.slane %v434_v36, 4  ;;  %v449_v57 = vrot.slane %v447_v38, 5  ;;  %v454_v59 = vrot.slane %v452_v41, 4  ;;  %v457_v61 = vrot.slane %v455_v50, 5  ;;  %v4388_v37 = vld [vmem:[%s4153_s29 + $0x70] sm:$0xf] }
  0x39   : > { %v426_v60 = vsel %vm4200_vm4, %v421_v45, %v425_v22  ;;  %v463_v62 = vrot.slane %v461_v51, 5  ;;  %v465_v0 = vshrl.u32 %v4350_v28, 16  ;;  %v444_v18 = vor.u32 %v443_v56, %v439_v32  ;;  %v4539_v8 = vld [vmem:[%s4153_s29 + $0xa0] sm:$0xf] }
  0x3a   : > { %v4374_v1 = vcombine.low %v416_v42, %v426_v60  ;;  %v440_v13 = vsel %vm4200_vm4, %v435_v52, %v439_v32  ;;  %v471_v23 = vshll.u32 %v4364_v48, 16  ;;  %v458_v22 = vor.u32 %v457_v61, %v454_v59  ;;  %v4401_v52 = vld [vmem:[%s4153_s29 + $0x74] sm:$0x1] }
  0x3b   : > { %v467_v30 = vrot.slane %v465_v0, 4  ;;  %v3158_v31 = vrot.slane %v4178_v17, 9  ;;  %v1227_v36 = vrot.slane %v4181_v19, 5  ;;  %v445_v32 = vrot.slane %v444_v18, 4 }
  0x3c   : > { %5249 = vst [vmem:[#allocation9_spill] sm:$0xff] %v4374_v1  ;;  %3621 = vmatmul.mubr.msk.bf16.gmra.mrb[8].mxu0 %vm693_vm3, %v4374_v1  ;;  %3488 = vmatprep.mubr.msk.bf16.mxu1 %vm693_vm3, %v4374_v1  ;;  %v473_v38 = vrot.slane %v471_v23, 5  ;;  %v476_v41 = vshrl.u32 %v4372_v55, 16  ;;  %v479_v42 = vshll.u32 %v4372_v55, 16  ;;  %v459_v45 = vrot.slane %v458_v22, 4 }
  0x3d   : > { %v468_v50 = vor.u32 %v467_v30, %v463_v62  ;;  %v1228_v17 = vsel %vm4381_vm7, %v3158_v31, %v1227_v36  ;;  %v1229_v19 = vrot.slane %v1227_v36, 4  ;;  %v450_v51 = vsel %vm4200_vm4, %v445_v32, %v449_v57  ;;  %v4413_v57 = vld [vmem:[%s4153_s29 + $0x78] sm:$0xf]  ;;  %v4429_v32 = vld [vmem:[%s4153_s29 + $0x7c] sm:$0xf] }
  0x3e   : > { %v478_v56 = vrot.slane %v476_v41, 4  ;;  %v481_v59 = vrot.slane %v479_v42, 5  ;;  %v485_v60 = vshll.u32 %v4388_v37, 16  ;;  %v4404_v61 = vcombine.low %v440_v13, %v450_v51 }
  0x3f   : > { %v464_v0 = vsel %vm4200_vm4, %v459_v45, %v463_v62  ;;  %v469_v18 = vrot.slane %v468_v50, 4  ;;  %v1231_v23 = vsel %vm4381_vm7, %v1229_v19, %v1230_v46  ;;  %v489_v36 = vshrl.u32 %v4388_v37, 16  ;;  %v4434_v50 = vld [vmem:[%s4153_s29 + $0x80] sm:$0x1] }
  0x40   : > { %5252 = vst [vmem:[#allocation10_spill] sm:$0xff] %v4404_v61  ;;  %v4415_v22 = vcombine.low %v1228_v17, %v1231_v23  ;;  %v482_v30 = vor.u32 %v481_v59, %v478_v56  ;;  %v487_v31 = vrot.slane %v485_v60, 5  ;;  %3624 = vmatprep.mubr.msk.bf16.mxu0 %vm693_vm3, %v4404_v61  ;;  %3489 = vmatmul.mubr.msk.bf16.gmra.mrb[12].mxu1 %vm693_vm3, %v4404_v61  ;;  %v495_v46 = vshll.u32 %v4401_v52, 16  ;;  %v4532_v61 = vld [vmem:[%s4153_s29 + $0x9c] sm:$0xf] }
  0x41   : > { %v474_v20 = vsel %vm4200_vm4, %v469_v18, %v473_v38  ;;  %v3159_v62 = vrot.slane %v4196_v34, 9  ;;  %v1236_v13 = vrot.slane %v1234_v2, 4  ;;  %v491_v45 = vrot.slane %v489_v36, 4 }
  0x42   : > { %5253 = vst [vmem:[#allocation11_spill] sm:$0xff] %v4415_v22  ;;  %v4431_v41 = vcombine.low %v464_v0, %v474_v20  ;;  %v483_v42 = vrot.slane %v482_v30, 4  ;;  %v500_v17 = vshrl.u32 %v4413_v57, 16  ;;  %v497_v19 = vrot.slane %v495_v46, 5  ;;  %v4460_v30 = vld [vmem:[%s4153_s29 + $0x84] sm:$0xf] }
  0x43   : > { %v1235_v38 = vsel %vm4381_vm7, %v3159_v62, %v1234_v2  ;;  %v1238_v51 = vsel %vm4381_vm7, %v1236_v13, %v1237_v3  ;;  %v503_v56 = vshll.u32 %v4413_v57, 16  ;;  %v492_v60 = vor.u32 %v491_v45, %v487_v31 }
  0x44   : > { %5254 = vst [vmem:[#allocation12_spill] sm:$0xff] %v4431_v41  ;;  %3625 = vmatmul.mubr.msk.bf16.gmra.mrb[12].mxu0 %vm693_vm3, %v4431_v41  ;;  %3492 = vmatprep.mubr.msk.bf16.mxu1 %vm693_vm3, %v4431_v41  ;;  %v488_v59 = vsel %vm4200_vm4, %v483_v42, %v487_v31  ;;  %v4452_v0 = vcombine.low %v1235_v38, %v1238_v51  ;;  %v502_v2 = vrot.slane %v500_v17, 4  ;;  %v509_v3 = vshll.u32 %v4429_v32, 16  ;;  %v4466_v17 = vld [vmem:[%s4153_s29 + $0x88] sm:$0xf] }
  0x45   : > { %3646 = vmatprep.mubr.msk.bf16.mxu0 %vm693_vm3, %v4415_v22  ;;  %v505_v47 = vrot.slane %v503_v56, 5  ;;  %v513_v18 = vshrl.u32 %v4429_v32, 16  ;;  %v519_v23 = vshll.u32 %v4434_v50, 16  ;;  %v493_v36 = vrot.slane %v492_v60, 4 }
  0x46   : > { %5255 = vst [vmem:[#allocation13_spill] sm:$0xff] %v4452_v0  ;;  %v3160_v31 = vrot.slane %v4223_v58, 9  ;;  %v1241_v20 = vrot.slane %v4228_v63, 5  ;;  %v1244_v46 = vrot.slane %v4236_v5, 5  ;;  %v511_v13 = vrot.slane %v509_v3, 5 }
  0x47   : > { %v506_v62 = vor.u32 %v505_v47, %v502_v2  ;;  %v515_v42 = vrot.slane %v513_v18, 4  ;;  %v521_v45 = vrot.slane %v519_v23, 5  ;;  %v498_v38 = vsel %vm4200_vm4, %v493_v36, %v497_v19  ;;  %v4476_v2 = vld [vmem:[%s4153_s29 + $0x8c] sm:$0x1] }
  0x48   : > { %v1242_v51 = vsel %vm4381_vm7, %v3160_v31, %v1241_v20  ;;  %v1243_v56 = vrot.slane %v1241_v20, 4  ;;  %v524_v60 = vshrl.u32 %v4460_v30, 16  ;;  %v4473_v4 = vcombine.low %v488_v59, %v498_v38 }
  0x49   : > { %v507_v41 = vrot.slane %v506_v62, 4  ;;  %v516_v5 = vor.u32 %v515_v42, %v511_v13  ;;  %v527_v47 = vshll.u32 %v4460_v30, 16  ;;  %v533_v19 = vshll.u32 %v4466_v17, 16  ;;  %v4490_v62 = vld [vmem:[%s4153_s29 + $0x90] sm:$0xf] }
  0x4a   : > { %5256 = vst [vmem:[#allocation14_spill] sm:$0xff] %v4473_v4  ;;  %v1245_v3 = vsel %vm4381_vm7, %v1243_v56, %v1244_v46  ;;  %v526_v18 = vrot.slane %v524_v60, 4  ;;  %v537_v23 = vshrl.u32 %v4466_v17, 16  ;;  %3493 = vmatmul.mubr.msk.bf16.gmra.mrb[16].mxu1 %vm693_vm3, %v4473_v4  ;;  %v4495_v46 = vld [vmem:[%s5206_s1 + $0xe] sm:$0x3]  ;;  %v1248_v60 = vrot.slane %v4254_v29, 5 }
  0x4b   : > { %v512_v59 = vsel %vm4200_vm4, %v507_v41, %v511_v13  ;;  %v517_v36 = vrot.slane %v516_v5, 4  ;;  %v4487_v31 = vcombine.low %v1242_v51, %v1245_v3  ;;  %v529_v20 = vrot.slane %v527_v47, 5  ;;  %5258 = vst [vmem:[#allocation16_spill] sm:$0xff] %v4495_v46  ;;  %v4509_v47 = vld [vmem:[%s4153_s29 + $0x94] sm:$0xf] }
  0x4c   : > { %3647 = vmatmul.mubr.msk.bf16.vlgmr.msra.gmra.mrb[0].mxu0 %vm693_vm3, %v4452_v0  ;;  %v535_v42 = vrot.slane %v533_v19, 5  ;;  %v539_v38 = vrot.slane %v537_v23, 4  ;;  %v543_v41 = vshll.u32 %v4476_v2, 16  ;;  %v3161_v13 = vrot.slane %v4242_v15, 9  ;;  %v4514_v4 = vld [vmem:[%s4153_s29 + $0x98] sm:$0x1] }
  0x4d   : > { %5257 = vst [vmem:[#allocation15_spill] sm:$0xff] %v4487_v31  ;;  %3679 = vmatpush3.bf16.msra.mxu0 %v4188_v21  ;;  %v522_v51 = vsel %vm4200_vm4, %v517_v36, %v521_v45  ;;  %3650 = vmatprep.mubr.msk.bf16.mxu0 %vm693_vm3, %v4487_v31  ;;  %v530_v56 = vor.u32 %v529_v20, %v526_v18  ;;  %v1251_v5 = vrot.slane %v4261_v33, 5  ;;  %v548_v21 = vshrl.u32 %v4490_v62, 16 }
  0x4e   : > { %v4511_v3 = vcombine.low %v512_v59, %v522_v51  ;;  %v540_v19 = vor.u32 %v539_v38, %v535_v42  ;;  %v545_v23 = vrot.slane %v543_v41, 5  ;;  %4046 = vmatprep.subr.msk.bf16.mxu0 %vm742_vm0, %v4495_v46  ;;  %v1249_v18 = vsel %vm4381_vm7, %v3161_v13, %v1248_v60 }
  0x4f   : > { %v531_v45 = vrot.slane %v530_v56, 4  ;;  %v1250_v36 = vrot.slane %v1248_v60, 4  ;;  %v551_v33 = vshll.u32 %v4490_v62, 16  ;;  %v550_v20 = vrot.slane %v548_v21, 4 }
  0x50   : > { %5259 = vst [vmem:[#allocation17_spill] sm:$0xff] %v4511_v3  ;;  %3496 = vmatprep.mubr.msk.bf16.mxu1 %vm693_vm3, %v4511_v3  ;;  %v541_v59 = vrot.slane %v540_v19, 4  ;;  %v557_v38 = vshll.u32 %v4509_v47, 16  ;;  %v561_v41 = vshrl.u32 %v4509_v47, 16  ;;  %v567_v60 = vshll.u32 %v4514_v4, 16 }
  0x51   : > { %v536_v51 = vsel %vm4200_vm4, %v531_v45, %v535_v42  ;;  %v1252_v56 = vsel %vm4381_vm7, %v1250_v36, %v1251_v5  ;;  %v553_v13 = vrot.slane %v551_v33, 5  ;;  %v3162_v5 = vrot.slane %v4269_v49, 9 }
  0x52   : > { %v546_v3 = vsel %vm4200_vm4, %v541_v59, %v545_v23  ;;  %v4536_v19 = vcombine.low %v1249_v18, %v1252_v56  ;;  %v559_v21 = vrot.slane %v557_v38, 5  ;;  %v563_v1 = vrot.slane %v561_v41, 4  ;;  %v4552_v59 = vld [vmem:[%s4153_s29 + $0xa4] sm:$0x1] }
  0x53   : > { %v4541_v44 = vcombine.low %v536_v51, %v546_v3  ;;  %v554_v42 = vor.u32 %v553_v13, %v550_v20  ;;  %v569_v45 = vrot.slane %v567_v60, 5  ;;  %v1255_v33 = vrot.slane %v4277_v53, 5 }
  0x54   : > { %5260 = vst [vmem:[#allocation18_spill] sm:$0xff] %v4536_v19  ;;  %3651 = vmatmul.mubr.msk.bf16.gmra.mrb[4].mxu0 %vm693_vm3, %v4536_v19  ;;  %v564_v36 = vor.u32 %v563_v1, %v559_v21  ;;  %v1258_v23 = vrot.slane %v4289_v6, 5  ;;  %v572_v18 = vshrl.u32 %v4532_v61, 16  ;;  %v575_v20 = vshll.u32 %v4532_v61, 16 }
  0x55   : > { %5261 = vst [vmem:[#allocation19_spill] sm:$0xff] %v4541_v44  ;;  %3497 = vmatmul.mubr.msk.bf16.gmra.mrb[20].mxu1 %vm693_vm3, %v4541_v44  ;;  %v555_v3 = vrot.slane %v554_v42, 4  ;;  %v581_v38 = vshll.u32 %v4539_v8, 16  ;;  %v585_v1 = vshrl.u32 %v4539_v8, 16  ;;  %v1256_v6 = vsel %vm4381_vm7, %v3162_v5, %v1255_v33 }
  0x56   : > { %v565_v41 = vrot.slane %v564_v36, 4  ;;  %v1257_v51 = vrot.slane %v1255_v33, 4  ;;  %v574_v56 = vrot.slane %v572_v18, 4  ;;  %v577_v60 = vrot.slane %v575_v20, 5  ;;  %v4571_v33 = vld [vmem:[%s4153_s29 + $0xac] sm:$0xf] }
  0x57   : > { %v560_v13 = vsel %vm4200_vm4, %v555_v3, %v559_v21  ;;  %v583_v42 = vrot.slane %v581_v38, 5  ;;  %v587_v44 = vrot.slane %v585_v1, 4  ;;  %v591_v36 = vshll.u32 %v4552_v59, 16 }
  0x58   : > { %v570_v54 = vsel %vm4200_vm4, %v565_v41, %v569_v45  ;;  %v1259_v19 = vsel %vm4381_vm7, %v1257_v51, %v1258_v23  ;;  %v3163_v5 = vrot.slane %v4294_v14, 9  ;;  %v578_v3 = vor.u32 %v577_v60, %v574_v56 }
  0x59   : > { %v4573_v18 = vcombine.low %v560_v13, %v570_v54  ;;  %v4575_v21 = vcombine.low %v1256_v6, %v1259_v19  ;;  %v588_v20 = vor.u32 %v587_v44, %v583_v42  ;;  %v593_v38 = vrot.slane %v591_v36, 5  ;;  %v4585_v19 = vld [vmem:[%s4153_s29 + $0xb0] sm:$0x1] }
  0x5a   : > { %v1262_v1 = vrot.slane %v4301_v25, 5  ;;  %v1265_v45 = vrot.slane %v4318_v9, 5  ;;  %v596_v23 = vshrl.u32 %v4562_v26, 16  ;;  %v579_v54 = vrot.slane %v578_v3, 4 }
  0x5b   : > { %5262 = vst [vmem:[#allocation20_spill] sm:$0xff] %v4573_v18  ;;  %5263 = vst [vmem:[#allocation21_spill] sm:$0xff] %v4575_v21  ;;  %3500 = vmatprep.mubr.msk.bf16.mxu1 %vm693_vm3, %v4573_v18  ;;  %3654 = vmatprep.mubr.msk.bf16.mxu0 %vm693_vm3, %v4575_v21  ;;  %v589_v41 = vrot.slane %v588_v20, 4  ;;  %v599_v44 = vshll.u32 %v4562_v26, 16  ;;  %v605_v6 = vshll.u32 %v4571_v33, 16  ;;  %v609_v13 = vshrl.u32 %v4571_v33, 16 }
  0x5c   : > { %v1263_v9 = vsel %vm4381_vm7, %v3163_v5, %v1262_v1  ;;  %v1264_v51 = vrot.slane %v1262_v1, 4  ;;  %v598_v56 = vrot.slane %v596_v23, 4  ;;  %v584_v60 = vsel %vm4200_vm4, %v579_v54, %v583_v42  ;;  %v4597_v18 = vld [vmem:[%s4153_s29 + $0xb4] sm:$0xf]  ;;  %v4609_v54 = vld [vmem:[%s4153_s29 + $0xb8] sm:$0xf] }
  0x5d   : > { %v594_v36 = vsel %vm4200_vm4, %v589_v41, %v593_v38  ;;  %v601_v3 = vrot.slane %v599_v44, 5  ;;  %v607_v20 = vrot.slane %v605_v6, 5  ;;  %v611_v1 = vrot.slane %v609_v13, 4 }
  0x5e   : > { %v4599_v21 = vcombine.low %v584_v60, %v594_v36  ;;  %v1266_v5 = vsel %vm4381_vm7, %v1264_v51, %v1265_v45  ;;  %v615_v23 = vshll.u32 %v4585_v19, 16  ;;  %v3164_v42 = vrot.slane %v4323_v43, 9  ;;  %v4615_v45 = vld [vmem:[%s4153_s29 + $0xbc] sm:$0x1] }
  0x5f   : > { %v4604_v31 = vcombine.low %v1263_v9, %v1266_v5  ;;  %v602_v0 = vor.u32 %v601_v3, %v598_v56  ;;  %v1269_v38 = vrot.slane %v4328_v7, 5  ;;  %v612_v41 = vor.u32 %v611_v1, %v607_v20 }
  0x60   : > { %5264 = vst [vmem:[#allocation22_spill] sm:$0xff] %v4599_v21  ;;  %3501 = vmatmul.mubr.msk.bf16.gmra.mrb[24].mxu1 %vm693_vm3, %v4599_v21  ;;  %v617_v44 = vrot.slane %v615_v23, 5  ;;  %v1272_v6 = vrot.slane %v4341_v12, 5  ;;  %v620_v51 = vshrl.u32 %v4597_v18, 16  ;;  %v623_v60 = vshll.u32 %v4597_v18, 16 }
  0x61   : > { %5265 = vst [vmem:[#allocation23_spill] sm:$0xff] %v4604_v31  ;;  %3655 = vmatmul.mubr.msk.bf16.gmra.mrb[8].mxu0 %vm693_vm3, %v4604_v31  ;;  %v603_v9 = vrot.slane %v602_v0, 4  ;;  %v1270_v56 = vsel %vm4381_vm7, %v3164_v42, %v1269_v38  ;;  %v1271_v13 = vrot.slane %v1269_v38, 4  ;;  %v613_v36 = vrot.slane %v612_v41, 4 }
  0x62   : > { %v622_v3 = vrot.slane %v620_v51, 4  ;;  %v629_v5 = vshll.u32 %v4609_v54, 16  ;;  %v633_v12 = vshrl.u32 %v4609_v54, 16  ;;  %v625_v21 = vrot.slane %v623_v60, 5 }
  0x63   : > { %v608_v1 = vsel %vm4200_vm4, %v603_v9, %v607_v20  ;;  %v1273_v23 = vsel %vm4381_vm7, %v1271_v13, %v1272_v6  ;;  %v639_v0 = vshll.u32 %v4615_v45, 16  ;;  %v618_v42 = vsel %vm4200_vm4, %v613_v36, %v617_v44 }
  0x64   : > { %v4632_v38 = vcombine.low %v1270_v56, %v1273_v23  ;;  %v631_v41 = vrot.slane %v629_v5, 5  ;;  %v635_v51 = vrot.slane %v633_v12, 4  ;;  %v4634_v31 = vcombine.low %v608_v1, %v618_v42 }
  0x65   : > { %v626_v22 = vor.u32 %v625_v21, %v622_v3  ;;  %v641_v46 = vrot.slane %v639_v0, 5  ;;  %v3165_v43 = vrot.slane %v4345_v16, 9  ;;  %v1276_v6 = vrot.slane %v4350_v28, 5 }
  0x66   : > { %3658 = vmatprep.mubr.msk.bf16.mxu0 %vm693_vm3, %v4632_v38  ;;  %v636_v20 = vor.u32 %v635_v51, %v631_v41  ;;  %v1279_v9 = vrot.slane %v4364_v48, 5  ;;  %v3166_v44 = vrot.slane %v4372_v55, 9  ;;  %3504 = vmatprep.mubr.msk.bf16.mxu1 %vm693_vm3, %v4634_v31  ;;  %v3125_v21 = vcombine.low %v4167_v10, %v4170_v11 }
  0x67   : > { %v627_v56 = vrot.slane %v626_v22, 4  ;;  %v1283_v13 = vrot.slane %v4388_v37, 5  ;;  %v1286_v60 = vrot.slane %v4401_v52, 5  ;;  %v1277_v3 = vsel %vm4381_vm7, %v3165_v43, %v1276_v6 }
  0x68   : > { %v637_v36 = vrot.slane %v636_v20, 4  ;;  %v1278_v5 = vrot.slane %v1276_v6, 4  ;;  %v1290_v48 = vrot.slane %v4429_v32, 5  ;;  %v3167_v10 = vrot.slane %v4413_v57, 9 }
  0x69   : > { %v632_v12 = vsel %vm4200_vm4, %v627_v56, %v631_v41  ;;  %v1284_v22 = vsel %vm4381_vm7, %v3166_v44, %v1283_v13  ;;  %v1285_v1 = vrot.slane %v1283_v13, 4  ;;  %v1293_v43 = vrot.slane %v4434_v50, 5 }
  0x6a   : > { %v642_v11 = vsel %vm4200_vm4, %v637_v36, %v641_v46  ;;  %v1280_v52 = vsel %vm4381_vm7, %v1278_v5, %v1279_v9  ;;  %v1292_v23 = vrot.slane %v1290_v48, 4  ;;  %v3168_v20 = vrot.slane %v4460_v30, 9 }
  0x6b   : > { %v4661_v0 = vcombine.low %v632_v12, %v642_v11  ;;  %v4663_v42 = vcombine.low %v1277_v3, %v1280_v52  ;;  %v1287_v41 = vsel %vm4381_vm7, %v1285_v1, %v1286_v60  ;;  %v1297_v6 = vrot.slane %v4466_v17, 5 }
  0x6c   : > { %v4667_v51 = vcombine.low %v1284_v22, %v1287_v41  ;;  %v1300_v50 = vrot.slane %v4476_v2, 5  ;;  %v1291_v46 = vsel %vm4381_vm7, %v3167_v10, %v1290_v48  ;;  %v1294_v9 = vsel %vm4381_vm7, %v1292_v23, %v1293_v43 }
  0x6d   : > { %3505 = vmatmul.mubr.msk.bf16.gmra.mrb[28].mxu1 %vm693_vm3, %v4661_v0  ;;  %3659 = vmatmul.mubr.msk.bf16.gmra.mrb[12].mxu0 %vm693_vm3, %v4663_v42  ;;  %v1299_v44 = vrot.slane %v1297_v6, 4  ;;  %v1304_v56 = vrot.slane %v4509_v47, 5  ;;  %v1311_v13 = vrot.slane %v4539_v8, 5  ;;  %v1298_v60 = vsel %vm4381_vm7, %v3168_v20, %v1297_v6 }
  0x6e   : > { %3510 = vmatprep.mubr.msk.bf16.mxu1 %vm693_vm3, %v3125_v21  ;;  %3662 = vmatprep.mubr.msk.bf16.mxu0 %vm693_vm3, %v4667_v51  ;;  %v4689_v21 = vcombine.low %v1291_v46, %v1294_v9  ;;  %v3169_v36 = vrot.slane %v4490_v62, 9  ;;  %v1307_v5 = vrot.slane %v4514_v4, 5  ;;  %v4695_v48 = vcombine.low %v4196_v34, %v4209_v40  ;;  %v4707_v4 = vld [vmem:[%s5206_s1 + $0x6] sm:$0x3] }
  0x6f   : > { %v1301_v2 = vsel %vm4381_vm7, %v1299_v44, %v1300_v50  ;;  %v1306_v3 = vrot.slane %v1304_v56, 4  ;;  %v3170_v12 = vrot.slane %v4532_v61, 9  ;;  %v1429_v22 = vsel %vm742_vm0, %v4249_v24, 0 }
  0x70   : > { %v4700_v1 = vcombine.low %v1298_v60, %v1301_v2  ;;  %v1313_v10 = vrot.slane %v1311_v13, 4  ;;  %v1314_v11 = vrot.slane %v4552_v59, 5  ;;  %v1318_v52 = vrot.slane %v4571_v33, 5 }
  0x71   : > { %v1305_v34 = vsel %vm4381_vm7, %v3169_v36, %v1304_v56  ;;  %v1308_v40 = vsel %vm4381_vm7, %v1306_v3, %v1307_v5  ;;  %v4721_v24 = vcombine.low %v4223_v58, %v4228_v63  ;;  %v1312_v59 = vsel %vm4381_vm7, %v3170_v12, %v1311_v13 }
  0x72   : > { %v4727_v23 = vcombine.low %v4345_v16, %v4350_v28  ;;  %v1315_v43 = vsel %vm4381_vm7, %v1313_v10, %v1314_v11  ;;  %v3171_v41 = vrot.slane %v4562_v26, 9  ;;  %v1325_v20 = vrot.slane %v4609_v54, 5 }
  0x73   : > { %v4737_v58 = vcombine.low %v4372_v55, %v4388_v37  ;;  %v4741_v63 = vcombine.low %v1305_v34, %v1308_v40  ;;  %v1320_v16 = vrot.slane %v1318_v52, 4  ;;  %v1321_v28 = vrot.slane %v4585_v19, 5  ;;  %v251_v19 = vld [vmem:[%s4153_s29 + $0xc8] sm:$0x1] }
  0x74   : > { %v4746_v6 = vcombine.low %v4413_v57, %v4429_v32  ;;  %v4750_v50 = vcombine.low %v4460_v30, %v4466_v17  ;;  %v4754_v55 = vcombine.low %v4490_v62, %v4509_v47  ;;  %v4758_v37 = vcombine.low %v4532_v61, %v4539_v8  ;;  %v4777_v62 = vld [vmem:[%s4153_s29 + $0xc4] sm:$0xf] }
  0x75   : > { %3511 = vmatmul.mubr.msk.bf16.vlgmr.msra.gmra.mrb[0].mxu1 %vm693_vm3, %v4206_v39  ;;  %3663 = vmatmul.mubr.msk.bf16.gmra.mrb[16].mxu0 %vm693_vm3, %v4689_v21  ;;  %v4762_v46 = vcombine.low %v4562_v26, %v4571_v33  ;;  %v4766_v57 = vcombine.low %v4242_v15, %v4254_v29  ;;  %v4768_v32 = vcombine.low %v1312_v59, %v1315_v43  ;;  %v3172_v17 = vrot.slane %v4597_v18, 9  ;;  %v5266_v43 = vld [vmem:[#allocation6_spill] sm:$0xff] }
  0x76   : > { %3543 = vmatpush3.bf16.msra.mxu1 %v1429_v22  ;;  %3514 = vmatprep.mubr.msk.bf16.mxu1 %vm693_vm3, %v4695_v48  ;;  %v4772_v30 = vcombine.low %v4597_v18, %v4609_v54  ;;  %v1327_v8 = vrot.slane %v1325_v20, 4  ;;  %v1328_v61 = vrot.slane %v4615_v45, 5  ;;  %v1319_v15 = vsel %vm4381_vm7, %v3171_v41, %v1318_v52  ;;  %v4797_v18 = vld [vmem:[%s4153_s29 + $0xc0] sm:$0xf] }
  0x77   : > { %3666 = vmatprep.mubr.msk.bf16.mxu0 %vm693_vm3, %v4700_v1  ;;  %4041 = vmatprep.subr.msk.bf16.mxu1 %vm742_vm0, %v4707_v4  ;;  %v1322_v29 = vsel %vm4381_vm7, %v1320_v16, %v1321_v28  ;;  %v2061_v26 = vrot.slane %v4777_v62, 5  ;;  %v1326_v47 = vsel %vm4381_vm7, %v3172_v17, %v1325_v20  ;;  %v4802_v54 = vcombine.low %v4269_v49, %v4277_v53 }
  0x78   : > { %v1329_v33 = vsel %vm4381_vm7, %v1327_v8, %v1328_v61  ;;  %v4804_v45 = vcombine.low %v1319_v15, %v1322_v29  ;;  %v4808_v9 = vcombine.low %v4294_v14, %v4301_v25  ;;  %v1831_v44 = vshrl.u32 %v4797_v18, 16  ;;  %v3298_v61 = vld [vmem:[%s5206_s1 + $0x10] sm:$0x3]  ;;  %v4077_v15 = vld [vmem:[%s4153_s29 + $0x4] sm:$0xf] }
  0x79   : > { %v1834_v56 = vshll.u32 %v4797_v18, 16  ;;  %v1840_v13 = vshll.u32 %v4777_v62, 16  ;;  %v1844_v60 = vshrl.u32 %v4777_v62, 16  ;;  %v4814_v2 = vcombine.low %v1326_v47, %v1329_v33  ;;  %v4079_v33 = vld [vmem:[%s4153_s29] sm:$0xf] }
  0x7a   : > { %v3242_v36 = vrot.slane %v4797_v18, 9  ;;  %v2063_v49 = vrot.slane %v2061_v26, 4  ;;  %v2064_v53 = vrot.slane %v251_v19, 5  ;;  %v1833_v3 = vrot.slane %v1831_v44, 4 }
  0x7b   : > { %v1836_v5 = vrot.slane %v1834_v56, 5  ;;  %v1842_v12 = vrot.slane %v1840_v13, 5  ;;  %v1846_v22 = vrot.slane %v1844_v60, 4  ;;  %v1850_v10 = vshll.u32 %v251_v19, 16 }
  0x7c   : > { %v2062_v11 = vsel %vm4381_vm7, %v3242_v36, %v2061_v26  ;;  %v2065_v52 = vsel %vm4381_vm7, %v2063_v49, %v2064_v53  ;;  %v4831_v41 = vcombine.low %v5266_v43, %v4328_v7  ;;  %v5267_v7 = vld [vmem:[#allocation16_spill] sm:$0xff]  ;;  %v1220_v29 = vrot.slane %v4077_v15, 5  ;;  %v4078_v26 = vld [vmem:[%s4153_s29 + $0x8] sm:$0x1]  ;;  %v5269_v53 = vld [vmem:[#allocation13_spill] sm:$0xff] }
  0x7d   : > { %3515 = vmatmul.mubr.msk.bf16.gmra.mrb[4].mxu1 %vm693_vm3, %v4721_v24  ;;  %3667 = vmatmul.mubr.msk.bf16.gmra.mrb[20].mxu0 %vm693_vm3, %v4741_v63  ;;  %v1837_v14 = vor.u32 %v1836_v5, %v1833_v3  ;;  %v1847_v25 = vor.u32 %v1846_v22, %v1842_v12  ;;  %v1852_v59 = vrot.slane %v1850_v10, 5  ;;  %v4833_v20 = vcombine.low %v2062_v11, %v2065_v52  ;;  %v5268_v49 = vld [vmem:[#allocation11_spill] sm:$0xff]  ;;  %v5271_v5 = vld [vmem:[#allocation18_spill] sm:$0xff]  ;;  %v5272_v22 = vld [vmem:[#allocation21_spill] sm:$0xff] }
  0x7e   : > { %3518 = vmatprep.mubr.msk.bf16.mxu1 %vm693_vm3, %v4766_v57  ;;  %3670 = vmatprep.mubr.msk.bf16.mxu0 %vm693_vm3, %v4768_v32  ;;  %v2509_v8 = vsel %vm742_vm0, %v5267_v7, 0  ;;  %v1223_v47 = vrot.slane %v4078_v26, 5  ;;  %v3157_v19 = vrot.slane %v4079_v33, 9  ;;  %v1222_v44 = vrot.slane %v1220_v29, 4  ;;  %v4080_v3 = vld [vmem:[%s5206_s1 + $0x8] sm:$0x3] }
  0x7f   : > { %v1838_v34 = vrot.slane %v1837_v14, 4  ;;  %v1848_v40 = vrot.slane %v1847_v25, 4  ;;  %v1635_v36 = vsel %vm742_vm0, %v4707_v4, 0  ;;  %v5270_v4 = vld [vmem:[#allocation15_spill] sm:$0xff]  ;;  %v4928_v25 = vld [vmem:[%s4153_s29 + $0xcc] sm:$0xf] }
  0x80   : > { %v1221_v56 = vsel %vm4381_vm7, %v3157_v19, %v1220_v29  ;;  %v1224_v13 = vsel %vm4381_vm7, %v1222_v44, %v1223_v47  ;;  %v5273_v14 = vld [vmem:[#allocation23_spill] sm:$0xff]  ;;  %v4931_v10 = vld [vmem:[%s4153_s29 + $0xd0] sm:$0xf]  ;;  %v4089_v52 = vmov 0   ;;  %v2477_v29 = vshrl.u32 %v4928_v25, 16 }
  0x81   : > { %v1843_v16 = vsel %vm4200_vm4, %v1838_v34, %v1842_v12  ;;  %v1853_v28 = vsel %vm4200_vm4, %v1848_v40, %v1852_v59  ;;  %v3174_v60 = vcombine.low %v1221_v56, %v1224_v13  ;;  %v4917_v12 = vcombine.low %v4797_v18, %v4777_v62  ;;  %v3316_v18 = vld [vmem:[#allocation2] ss:$0 sm:$0xff]  ;;  %v5274_v11 = vld [vmem:[#allocation4_spill] sm:$0xff]  ;;  %4058 = vset.pattern.permute.xlu0 %v4089_v52  ;;  %v5275_v40 = vld [vmem:[#allocation5_spill] sm:$0xff] }
  0x82   : > { %v4839_v17 = vcombine.low %v1843_v16, %v1853_v28  ;;  %v3262_v62 = vcombine.low %v4928_v25, %v4931_v10  ;;  %2923 = vperm.xlu0 %4058, %v3316_v18   ;;  %v2721_v34 = vsel %vm742_vm0, %v3298_v61, 0  ;;  %v5276_v59 = vld [vmem:[#allocation7_spill] sm:$0xff]  ;;  %v5277_v43 = vld [vmem:[#allocation8_spill] sm:$0xff]  ;;  %v5278_v16 = vld [vmem:[#allocation9_spill] sm:$0xff]  ;;  %v2480_v26 = vshll.u32 %v4928_v25, 16 }
  0x83   : > { %v5279_v28 = vld [vmem:[#allocation10_spill] sm:$0xff]  ;;  %v5280_v7 = vld [vmem:[#allocation12_spill] sm:$0xff]  ;;  %v5283_v15 = vld [vmem:[#allocation19_spill] sm:$0xff]  ;;  %v2490_v47 = vshrl.u32 %v4931_v10, 16  ;;  %v2707_v35 = vrot.slane %v4931_v10, 5 }
  0x84   : > { %v5284_v33 = vld [vmem:[#allocation3_spill] sm:$0xff]  ;;  %v5285_v19 = vld [vmem:[#allocation20_spill] sm:$0xff]  ;;  %v2482_v44 = vrot.slane %v2480_v26, 5 }
  0x85   : > { %3519 = vmatmul.mubr.msk.bf16.gmra.mrb[8].mxu1 %vm693_vm3, %v4802_v54  ;;  %3671 = vmatmul.mubr.msk.bf16.gmra.mrb[24].mxu0 %vm693_vm3, %v4804_v45  ;;  %v2492_v13 = vrot.slane %v2490_v47, 4 }
  0x86   : > { %3522 = vmatprep.mubr.msk.bf16.mxu1 %vm693_vm3, %v4808_v9  ;;  %3674 = vmatprep.mubr.msk.bf16.mxu0 %vm693_vm3, %v4814_v2 }
  0x8d   : > { %3523 = vmatmul.mubr.msk.bf16.gmra.mrb[12].mxu1 %vm693_vm3, %v4831_v41  ;;  %3675 = vmatmul.mubr.msk.bf16.gmra.mrb[28].mxu0 %vm693_vm3, %v4833_v20 }
  0x8e   : > { %3526 = vmatprep.mubr.msk.bf16.mxu1 %vm693_vm3, %v4727_v23  ;;  %3680 = vmatprep.mubr.msk.bf16.mxu0 %vm693_vm3, %v4695_v48 }
  0x95   : > { %3527 = vmatmul.mubr.msk.bf16.gmra.mrb[16].mxu1 %vm693_vm3, %v4737_v58  ;;  %3681 = vmatmul.mubr.msk.bf16.vlgmr.msra.gmra.mrb[0].mxu0 %vm693_vm3, %v4721_v24 }
  0x96   : > { %3713 = vmatpush3.bf16.msra.mxu0 %v2509_v8  ;;  %3530 = vmatprep.mubr.msk.bf16.mxu1 %vm693_vm3, %v4746_v6  ;;  %v5281_v8 = vld [vmem:[#allocation14_spill] sm:$0xff] }
  0x97   : > { %3684 = vmatprep.mubr.msk.bf16.mxu0 %vm693_vm3, %v4766_v57  ;;  %4047 = vmatprep.subr.msk.bf16.mxu0 %vm742_vm0, %v3298_v61  ;;  %v5282_v61 = vld [vmem:[#allocation17_spill] sm:$0xff] }
  0x9d   : > { %3531 = vmatmul.mubr.msk.bf16.gmra.mrb[20].mxu1 %vm693_vm3, %v4750_v50  ;;  %3685 = vmatmul.mubr.msk.bf16.gmra.mrb[4].mxu0 %vm693_vm3, %v4802_v54 }
  0x9e   : > { %3534 = vmatprep.mubr.msk.bf16.mxu1 %vm693_vm3, %v4754_v55  ;;  %3688 = vmatprep.mubr.msk.bf16.mxu0 %vm693_vm3, %v4808_v9 }
  0xa5   : > { %3535 = vmatmul.mubr.msk.bf16.gmra.mrb[24].mxu1 %vm693_vm3, %v4758_v37  ;;  %3689 = vmatmul.mubr.msk.bf16.gmra.mrb[8].mxu0 %vm693_vm3, %v4831_v41 }
  0xa6   : > { %3538 = vmatprep.mubr.msk.bf16.mxu1 %vm693_vm3, %v4762_v46  ;;  %3692 = vmatprep.mubr.msk.bf16.mxu0 %vm693_vm3, %v4727_v23 }
  0xad   : > { %3539 = vmatmul.mubr.msk.bf16.gmra.mrb[28].mxu1 %vm693_vm3, %v4772_v30  ;;  %3693 = vmatmul.mubr.msk.bf16.gmra.mrb[12].mxu0 %vm693_vm3, %v4737_v58 }
  0xae   : > { %3544 = vmatprep.mubr.msk.bf16.mxu1 %vm693_vm3, %v3174_v60  ;;  %3696 = vmatprep.mubr.msk.bf16.mxu0 %vm693_vm3, %v4746_v6  ;;  %v254_v60 = vld [vmem:[%s4153_s29 + $0xd4] sm:$0x1] }
  0xb5   : > { %3545 = vmatmul.mubr.msk.bf16.vlgmr.msra.gmra.mrb[0].mxu1 %vm693_vm3, %v5268_v49  ;;  %3697 = vmatmul.mubr.msk.bf16.gmra.mrb[16].mxu0 %vm693_vm3, %v4750_v50 }
  0xb6   : > { %3577 = vmatpush3.bf16.msra.mxu1 %v1635_v36  ;;  %3548 = vmatprep.mubr.msk.bf16.mxu1 %vm693_vm3, %v5269_v53  ;;  %v5286_v36 = vld [vmem:[#allocation22_spill] sm:$0xff] }
  0xb7   : > { %3700 = vmatprep.mubr.msk.bf16.mxu0 %vm693_vm3, %v4754_v55  ;;  %4043 = vmatprep.subr.msk.bf16.mxu1 %vm742_vm0, %v4080_v3  ;;  %v2496_v3 = vshll.u32 %v254_v60, 16 }
  0xbd   : > { %3549 = vmatmul.mubr.msk.bf16.gmra.mrb[4].mxu1 %vm693_vm3, %v5270_v4  ;;  %3701 = vmatmul.mubr.msk.bf16.gmra.mrb[20].mxu0 %vm693_vm3, %v4758_v37 }
  0xbe   : > { %3552 = vmatprep.mubr.msk.bf16.mxu1 %vm693_vm3, %v5271_v5  ;;  %3704 = vmatprep.mubr.msk.bf16.mxu0 %vm693_vm3, %v4762_v46 }
  0xc5   : > { %3553 = vmatmul.mubr.msk.bf16.gmra.mrb[8].mxu1 %vm693_vm3, %v5272_v22  ;;  %3705 = vmatmul.mubr.msk.bf16.gmra.mrb[24].mxu0 %vm693_vm3, %v4772_v30 }
  0xc6   : > { %3556 = vmatprep.mubr.msk.bf16.mxu1 %vm693_vm3, %v5273_v14  ;;  %3708 = vmatprep.mubr.msk.bf16.mxu0 %vm693_vm3, %v4917_v12 }
  0xcd   : > { %3557 = vmatmul.mubr.msk.bf16.gmra.mrb[12].mxu1 %vm693_vm3, %v4632_v38  ;;  %3709 = vmatmul.mubr.msk.bf16.gmra.mrb[28].mxu0 %vm693_vm3, %v3262_v62 }
  0xce   : > { %3560 = vmatprep.mubr.msk.bf16.mxu1 %vm693_vm3, %v4663_v42  ;;  %3714 = vmatprep.mubr.msk.bf16.mxu0 %vm693_vm3, %v5274_v11  ;;  %v2498_v11 = vrot.slane %v2496_v3, 5 }
  0xd5   : > { %3561 = vmatmul.mubr.msk.bf16.gmra.mrb[16].mxu1 %vm693_vm3, %v4667_v51  ;;  %3715 = vmatmul.mubr.msk.bf16.vlgmr.msra.gmra.mrb[0].mxu0 %vm693_vm3, %v5275_v40 }
  0xd6   : > { %3747 = vmatpush3.bf16.msra.mxu0 %v2721_v34  ;;  %3564 = vmatprep.mubr.msk.bf16.mxu1 %vm693_vm3, %v4689_v21 }
  0xd7   : > { %3718 = vmatprep.mubr.msk.bf16.mxu0 %vm693_vm3, %v5276_v59 }
  0xdd   : > { %3565 = vmatmul.mubr.msk.bf16.gmra.mrb[20].mxu1 %vm693_vm3, %v4700_v1  ;;  %3719 = vmatmul.mubr.msk.bf16.gmra.mrb[4].mxu0 %vm693_vm3, %v5277_v43 }
  0xde   : > { %3568 = vmatprep.mubr.msk.bf16.mxu1 %vm693_vm3, %v4741_v63  ;;  %3722 = vmatprep.mubr.msk.bf16.mxu0 %vm693_vm3, %v5278_v16 }
  0xe5   : > { %3569 = vmatmul.mubr.msk.bf16.gmra.mrb[24].mxu1 %vm693_vm3, %v4768_v32  ;;  %3723 = vmatmul.mubr.msk.bf16.gmra.mrb[8].mxu0 %vm693_vm3, %v5279_v28 }
  0xe6   : > { %3572 = vmatprep.mubr.msk.bf16.mxu1 %vm693_vm3, %v4804_v45  ;;  %3726 = vmatprep.mubr.msk.bf16.mxu0 %vm693_vm3, %v5280_v7 }
  0xed   : > { %3573 = vmatmul.mubr.msk.bf16.gmra.mrb[28].mxu1 %vm693_vm3, %v4814_v2  ;;  %3727 = vmatmul.mubr.msk.bf16.gmra.mrb[12].mxu0 %vm693_vm3, %v5281_v8 }
  0xee   : > { %3578 = vmatprep.mubr.msk.bf16.mxu1 %vm693_vm3, %v4206_v39  ;;  %3730 = vmatprep.mubr.msk.bf16.mxu0 %vm693_vm3, %v5282_v61  ;;  %v2486_v39 = vshll.u32 %v4931_v10, 16 }
  0xf0   : > { %v2488_v56 = vrot.slane %v2486_v39, 5 }
  0xf2   : > { %v2493_v49 = vor.u32 %v2492_v13, %v2488_v56 }
  0xf4   : > { %v2494_v18 = vrot.slane %v2493_v49, 4 }
  0xf5   : > { %3579 = vmatmul.mubr.msk.bf16.vlgmr.msra.gmra.mrb[0].mxu1 %vm693_vm3, %v4695_v48  ;;  %3731 = vmatmul.mubr.msk.bf16.gmra.mrb[16].mxu0 %vm693_vm3, %v5283_v15  ;;  %v2479_v48 = vrot.slane %v2477_v29, 4 }
  0xf6   : > { %3781 = vmatpush3.bf16.msra.mxu1 %v5284_v33  ;;  %3582 = vmatprep.mubr.msk.bf16.mxu1 %vm693_vm3, %v4721_v24 }
  0xf7   : > { %3734 = vmatprep.mubr.msk.bf16.mxu0 %vm693_vm3, %v5285_v19  ;;  %v2483_v24 = vor.u32 %v2482_v44, %v2479_v48 }
  0xf9   : > { %v2484_v62 = vrot.slane %v2483_v24, 4 }
  0xfd   : > { %3583 = vmatmul.mubr.msk.bf16.gmra.mrb[4].mxu1 %vm693_vm3, %v4766_v57  ;;  %3735 = vmatmul.mubr.msk.bf16.gmra.mrb[20].mxu0 %vm693_vm3, %v5286_v36  ;;  %v2489_v57 = vsel %vm4200_vm4, %v2484_v62, %v2488_v56 }
  0xfe   : > { %3586 = vmatprep.mubr.msk.bf16.mxu1 %vm693_vm3, %v4802_v54  ;;  %3738 = vmatprep.mubr.msk.bf16.mxu0 %vm693_vm3, %v4634_v31  ;;  %v2499_v54 = vsel %vm4200_vm4, %v2494_v18, %v2498_v11 }
  0xff   : > { %v3280_v52 = vcombine.low %v2489_v57, %v2499_v54 }
 0x105   : > { %3587 = vmatmul.mubr.msk.bf16.gmra.mrb[8].mxu1 %vm693_vm3, %v4808_v9  ;;  %3739 = vmatmul.mubr.msk.bf16.gmra.mrb[24].mxu0 %vm693_vm3, %v4661_v0 }
 0x106   : > { %3590 = vmatprep.mubr.msk.bf16.mxu1 %vm693_vm3, %v4831_v41  ;;  %3742 = vmatprep.mubr.msk.bf16.mxu0 %vm693_vm3, %v4839_v17 }
 0x10d   : > { %3591 = vmatmul.mubr.msk.bf16.gmra.mrb[12].mxu1 %vm693_vm3, %v4727_v23  ;;  %3743 = vmatmul.mubr.msk.bf16.gmra.mrb[28].mxu0 %vm693_vm3, %v3280_v52 }
 0x10e   : > { %3594 = vmatprep.mubr.msk.bf16.mxu1 %vm693_vm3, %v4737_v58  ;;  %3748 = vmatprep.mubr.msk.bf16.mxu0 %vm693_vm3, %v5269_v53 }
 0x115   : > { %3595 = vmatmul.mubr.msk.bf16.gmra.mrb[16].mxu1 %vm693_vm3, %v4746_v6  ;;  %3749 = vmatmul.mubr.msk.bf16.vlgmr.msra.gmra.mrb[0].mxu0 %vm693_vm3, %v5270_v4 }
 0x116   : > { %3598 = vmatprep.mubr.msk.bf16.mxu1 %vm693_vm3, %v4750_v50  ;;  %3752 = vmatprep.mubr.msk.bf16.mxu0 %vm693_vm3, %v5271_v5 }
 0x11d   : > { %3599 = vmatmul.mubr.msk.bf16.gmra.mrb[20].mxu1 %vm693_vm3, %v4754_v55  ;;  %3753 = vmatmul.mubr.msk.bf16.gmra.mrb[4].mxu0 %vm693_vm3, %v5272_v22 }
 0x11e   : > { %3602 = vmatprep.mubr.msk.bf16.mxu1 %vm693_vm3, %v4758_v37  ;;  %3756 = vmatprep.mubr.msk.bf16.mxu0 %vm693_vm3, %v5273_v14 }
 0x125   : > { %3603 = vmatmul.mubr.msk.bf16.gmra.mrb[24].mxu1 %vm693_vm3, %v4762_v46  ;;  %3757 = vmatmul.mubr.msk.bf16.gmra.mrb[8].mxu0 %vm693_vm3, %v4632_v38  ;;  %v3297_v38 = vrot.slane %v4928_v25, 9 }
 0x126   : > { %3606 = vmatprep.mubr.msk.bf16.mxu1 %vm693_vm3, %v4772_v30  ;;  %3760 = vmatprep.mubr.msk.bf16.mxu0 %vm693_vm3, %v4663_v42  ;;  %v2709_v42 = vrot.slane %v2707_v35, 4 }
 0x12d   : > { %3607 = vmatmul.mubr.msk.bf16.gmra.mrb[28].mxu1 %vm693_vm3, %v4917_v12  ;;  %3761 = vmatmul.mubr.msk.bf16.gmra.mrb[12].mxu0 %vm693_vm3, %v4667_v51  ;;  %v2710_v51 = vrot.slane %v254_v60, 5  ;;  %v5095_v12 = vld [vmem:[%s5207_s2] ss:$0 sm:$0xff] }
 0x12e   : > { %3628 = vmatprep.mubr.msk.bf16.mxu1 %vm693_vm3, %v5281_v8  ;;  %3764 = vmatprep.mubr.msk.bf16.mxu0 %vm693_vm3, %v4689_v21  ;;  %v2708_v21 = vsel %vm4381_vm7, %v3297_v38, %v2707_v35 }
 0x135   : > { %3629 = vmatmul.mubr.msk.bf16.vlgmr.msra.gmra.mrb[16].mxu1 %vm693_vm3, %v5282_v61  ;;  %3765 = vmatmul.mubr.msk.bf16.gmra.mrb[16].mxu0 %vm693_vm3, %v4700_v1  ;;  %v2711_v1 = vsel %vm4381_vm7, %v2709_v42, %v2710_v51 }
 0x136   : > { %3632 = vmatprep.mubr.msk.bf16.mxu1 %vm693_vm3, %v5283_v15  ;;  %3768 = vmatprep.mubr.msk.bf16.mxu0 %vm693_vm3, %v4741_v63  ;;  %v3299_v23 = vcombine.low %v2708_v21, %v2711_v1 }
 0x13d   : > { %3633 = vmatmul.mubr.msk.bf16.gmra.mrb[20].mxu1 %vm693_vm3, %v5285_v19  ;;  %3769 = vmatmul.mubr.msk.bf16.gmra.mrb[20].mxu0 %vm693_vm3, %v4768_v32 }
 0x13e   : > { %3636 = vmatprep.mubr.msk.bf16.mxu1 %vm693_vm3, %v5286_v36  ;;  %3772 = vmatprep.mubr.msk.bf16.mxu0 %vm693_vm3, %v4804_v45 }
 0x145   : > { %3637 = vmatmul.mubr.msk.bf16.gmra.mrb[24].mxu1 %vm693_vm3, %v4634_v31  ;;  %3773 = vmatmul.mubr.msk.bf16.gmra.mrb[24].mxu0 %vm693_vm3, %v4814_v2 }
 0x146   : > { %3640 = vmatprep.mubr.msk.bf16.mxu1 %vm693_vm3, %v4661_v0  ;;  %3776 = vmatprep.mubr.msk.bf16.mxu0 %vm693_vm3, %v4833_v20 }
 0x14d   : > { %3641 = vmatmul.mubr.msk.bf16.gmra.mrb[28].mxu1 %vm693_vm3, %v4839_v17  ;;  %3777 = vmatmul.mubr.msk.bf16.gmra.mrb[28].mxu0 %vm693_vm3, %v3299_v23  ;;  %v5089_v17 = vpop.permute.xlu0 %2923 }
 0x1c8   : > { %v3580_v31 = vpop.f32.mrb[0].mxu1 }
 0x1c9   : > { %v1671_v58 = vpop.f32.mrb[1].mxu1 }
 0x1ca   : > { %v3581_v63 = vpop.f32.mrb[2].mxu1 }
 0x1cb   : > { %v1674_v6 = vpop.f32.mrb[3].mxu1 }
 0x1d0   : > { %v3584_v0 = vpop.f32.mrb[4].mxu1 }
 0x1d1   : > { %v1687_v50 = vpop.f32.mrb[5].mxu1 }
 0x1d2   : > { %v3585_v55 = vpop.f32.mrb[6].mxu1 }
 0x1d3   : > { %v1690_v37 = vpop.f32.mrb[7].mxu1 }
 0x1d8   : > { %v3588_v46 = vpop.f32.mrb[8].mxu1 }
 0x1d9   : > { %v1703_v32 = vpop.f32.mrb[9].mxu1 }
 0x1da   : > { %v3589_v30 = vpop.f32.mrb[10].mxu1 }
 0x1db   : > { %v1706_v27 = vpop.f32.mrb[11].mxu1 }
 0x1e0   : > { %v5081_v45 = vpop.f32.mrb[12].mxu1 }
 0x1e1   : > { %v5083_v9 = vpop.f32.mrb[13].mxu1 }
 0x1e2   : > { %v5085_v2 = vpop.f32.mrb[14].mxu1 }
 0x1e3   : > { %v5087_v41 = vpop.f32.mrb[15].mxu1 }
 0x1e8   : > { %v3750_v20 = vpop.f32.mrb[0].mxu0 }
 0x1e9   : > { %v3782_v53 = vadd.f32 %v3750_v20, %v3580_v31  ;;  %v2757_v4 = vpop.f32.mrb[1].mxu0 }
 0x1ea   : > { %v3783_v5 = vadd.f32 %v2757_v4, %v1671_v58  ;;  %v3751_v22 = vpop.f32.mrb[2].mxu0 }
 0x1eb   : > { %v2928_v14 = vmul.f32 %v3782_v53, %v5089_v17  ;;  %v3784_v25 = vadd.f32 %v3751_v22, %v3581_v63  ;;  %v2760_v10 = vpop.f32.mrb[3].mxu0 }
 0x1ec   : > { %v2926_v34 = vmul.f32 %v3783_v5, %v5089_v17  ;;  %v3785_v40 = vadd.f32 %v2760_v10, %v1674_v6 }
 0x1ed   : > { %v2967_v59 = vadd.f32 %v5095_v12, %v2928_v14  ;;  %v2929_v43 = vmul.f32 %v3784_v25, %v5089_v17 }
 0x1ee   : > { %v2965_v16 = vadd.f32 %v5095_v12, %v2926_v34  ;;  %v2927_v28 = vmul.f32 %v3785_v40, %v5089_v17 }
 0x1ef   : > { %2999 = vst [vmem:[%s5101_s22 + $0x10] sm:$0xff] %v2967_v59  ;;  %v2968_v7 = vadd.f32 %v5095_v12, %v2929_v43 }
 0x1f0   : > { %2997 = vst [vmem:[%s5101_s22] sm:$0xff] %v2965_v16  ;;  %v2966_v8 = vadd.f32 %v5095_v12, %v2927_v28  ;;  %v3754_v61 = vpop.f32.mrb[4].mxu0 }
 0x1f1   : > { %3000 = vst [vmem:[%s5101_s22 + $0x18] sm:$0xff] %v2968_v7  ;;  %v3786_v15 = vadd.f32 %v3754_v61, %v3584_v0  ;;  %v2773_v29 = vpop.f32.mrb[5].mxu0 }
 0x1f2   : > { %2998 = vst [vmem:[%s5101_s22 + $0x8] sm:$0xff] %v2966_v8  ;;  %v3787_v26 = vadd.f32 %v2773_v29, %v1687_v50  ;;  %v3755_v47 = vpop.f32.mrb[6].mxu0 }
 0x1f3   : > { %v2932_v33 = vmul.f32 %v3786_v15, %v5089_v17  ;;  %v3788_v39 = vadd.f32 %v3755_v47, %v3585_v55  ;;  %v2776_v19 = vpop.f32.mrb[7].mxu0 }
 0x1f4   : > { %v2930_v48 = vmul.f32 %v3787_v26, %v5089_v17  ;;  %v3789_v44 = vadd.f32 %v2776_v19, %v1690_v37 }
 0x1f5   : > { %v2971_v56 = vadd.f32 %v5095_v12, %v2932_v33  ;;  %v2933_v13 = vmul.f32 %v3788_v39, %v5089_v17 }
 0x1f6   : > { %v2969_v60 = vadd.f32 %v5095_v12, %v2930_v48  ;;  %v2931_v36 = vmul.f32 %v3789_v44, %v5089_v17 }
 0x1f7   : > { %3003 = vst [vmem:[%s5101_s22 + $0x30] sm:$0xff] %v2971_v56  ;;  %v2972_v24 = vadd.f32 %v5095_v12, %v2933_v13 }
 0x1f8   : > { %3001 = vst [vmem:[%s5101_s22 + $0x20] sm:$0xff] %v2969_v60  ;;  %v2970_v49 = vadd.f32 %v5095_v12, %v2931_v36  ;;  %v3758_v3 = vpop.f32.mrb[8].mxu0 }
 0x1f9   : > { %3004 = vst [vmem:[%s5101_s22 + $0x38] sm:$0xff] %v2972_v24  ;;  %v3790_v62 = vadd.f32 %v3758_v3, %v3588_v46  ;;  %v2789_v18 = vpop.f32.mrb[9].mxu0 }
 0x1fa   : > { %3002 = vst [vmem:[%s5101_s22 + $0x28] sm:$0xff] %v2970_v49  ;;  %v3791_v11 = vadd.f32 %v2789_v18, %v1703_v32  ;;  %v3759_v57 = vpop.f32.mrb[10].mxu0 }
 0x1fb   : > { %v2936_v54 = vmul.f32 %v3790_v62, %v5089_v17  ;;  %v3792_v52 = vadd.f32 %v3759_v57, %v3589_v30  ;;  %v2792_v35 = vpop.f32.mrb[11].mxu0 }
 0x1fc   : > { %v2934_v38 = vmul.f32 %v3791_v11, %v5089_v17  ;;  %v3793_v42 = vadd.f32 %v2792_v35, %v1706_v27 }
 0x1fd   : > { %v2975_v51 = vadd.f32 %v5095_v12, %v2936_v54  ;;  %v2937_v21 = vmul.f32 %v3792_v52, %v5089_v17 }
 0x1fe   : > { %v2973_v1 = vadd.f32 %v5095_v12, %v2934_v38  ;;  %v2935_v23 = vmul.f32 %v3793_v42, %v5089_v17 }
 0x1ff   : > { %3007 = vst [vmem:[%s5101_s22 + $0x50] sm:$0xff] %v2975_v51  ;;  %v2976_v31 = vadd.f32 %v5095_v12, %v2937_v21 }
 0x200   : > { %3005 = vst [vmem:[%s5101_s22 + $0x40] sm:$0xff] %v2973_v1  ;;  %v2974_v58 = vadd.f32 %v5095_v12, %v2935_v23  ;;  %v3762_v63 = vpop.f32.mrb[12].mxu0 }
 0x201   : > { %3008 = vst [vmem:[%s5101_s22 + $0x58] sm:$0xff] %v2976_v31  ;;  %v3794_v6 = vadd.f32 %v3762_v63, %v5081_v45  ;;  %v2805_v0 = vpop.f32.mrb[13].mxu0 }
 0x202   : > { %3006 = vst [vmem:[%s5101_s22 + $0x48] sm:$0xff] %v2974_v58  ;;  %v3795_v50 = vadd.f32 %v2805_v0, %v5083_v9  ;;  %v3763_v55 = vpop.f32.mrb[14].mxu0 }
 0x203   : > { %v2940_v37 = vmul.f32 %v3794_v6, %v5089_v17  ;;  %v3796_v46 = vadd.f32 %v3763_v55, %v5085_v2  ;;  %v2808_v32 = vpop.f32.mrb[15].mxu0 }
 0x204   : > { %v2938_v30 = vmul.f32 %v3795_v50, %v5089_v17  ;;  %v3797_v27 = vadd.f32 %v2808_v32, %v5087_v41 }
 0x205   : > { %v2979_v20 = vadd.f32 %v5095_v12, %v2940_v37  ;;  %v2941_v45 = vmul.f32 %v3796_v46, %v5089_v17 }
 0x206   : > { %v2977_v53 = vadd.f32 %v5095_v12, %v2938_v30  ;;  %v2939_v9 = vmul.f32 %v3797_v27, %v5089_v17 }
 0x207   : > { %3011 = vst [vmem:[%s5101_s22 + $0x70] sm:$0xff] %v2979_v20  ;;  %v2980_v4 = vadd.f32 %v5095_v12, %v2941_v45 }
 0x208   : > { %3009 = vst [vmem:[%s5101_s22 + $0x60] sm:$0xff] %v2977_v53  ;;  %v2978_v2 = vadd.f32 %v5095_v12, %v2939_v9  ;;  %v3630_v5 = vpop.f32.mrb[16].mxu1  ;;  %v3766_v22 = vpop.f32.mrb[16].mxu0 }
 0x209   : > { %3012 = vst [vmem:[%s5101_s22 + $0x78] sm:$0xff] %v2980_v4  ;;  %v3798_v14 = vadd.f32 %v3766_v22, %v3630_v5  ;;  %v1963_v25 = vpop.f32.mrb[17].mxu1  ;;  %v2821_v41 = vpop.f32.mrb[17].mxu0 }
 0x20a   : > { %3010 = vst [vmem:[%s5101_s22 + $0x68] sm:$0xff] %v2978_v2  ;;  %v3799_v10 = vadd.f32 %v2821_v41, %v1963_v25  ;;  %v3631_v34 = vpop.f32.mrb[18].mxu1  ;;  %v3767_v40 = vpop.f32.mrb[18].mxu0 }
 0x20b   : > { %v2944_v59 = vmul.f32 %v3798_v14, %v5089_v17  ;;  %v3800_v43 = vadd.f32 %v3767_v40, %v3631_v34  ;;  %v1966_v16 = vpop.f32.mrb[19].mxu1  ;;  %v2824_v28 = vpop.f32.mrb[19].mxu0 }
 0x20c   : > { %v2942_v7 = vmul.f32 %v3799_v10, %v5089_v17  ;;  %v3801_v8 = vadd.f32 %v2824_v28, %v1966_v16 }
 0x20d   : > { %v2983_v61 = vadd.f32 %v5095_v12, %v2944_v59  ;;  %v2945_v15 = vmul.f32 %v3800_v43, %v5089_v17 }
 0x20e   : > { %v2981_v29 = vadd.f32 %v5095_v12, %v2942_v7  ;;  %v2943_v26 = vmul.f32 %v3801_v8, %v5089_v17 }
 0x20f   : > { %3015 = vst [vmem:[%s5101_s22 + $0x90] sm:$0xff] %v2983_v61  ;;  %v2984_v47 = vadd.f32 %v5095_v12, %v2945_v15 }
 0x210   : > { %3013 = vst [vmem:[%s5101_s22 + $0x80] sm:$0xff] %v2981_v29  ;;  %v2982_v33 = vadd.f32 %v5095_v12, %v2943_v26  ;;  %v3634_v39 = vpop.f32.mrb[20].mxu1  ;;  %v3770_v19 = vpop.f32.mrb[20].mxu0 }
 0x211   : > { %3016 = vst [vmem:[%s5101_s22 + $0x98] sm:$0xff] %v2984_v47  ;;  %v3802_v48 = vadd.f32 %v3770_v19, %v3634_v39  ;;  %v1979_v44 = vpop.f32.mrb[21].mxu1  ;;  %v2837_v56 = vpop.f32.mrb[21].mxu0 }
 0x212   : > { %3014 = vst [vmem:[%s5101_s22 + $0x88] sm:$0xff] %v2982_v33  ;;  %v3803_v13 = vadd.f32 %v2837_v56, %v1979_v44  ;;  %v3635_v60 = vpop.f32.mrb[22].mxu1  ;;  %v3771_v36 = vpop.f32.mrb[22].mxu0 }
 0x213   : > { %v2948_v24 = vmul.f32 %v3802_v48, %v5089_v17  ;;  %v3804_v49 = vadd.f32 %v3771_v36, %v3635_v60  ;;  %v1982_v3 = vpop.f32.mrb[23].mxu1  ;;  %v2840_v62 = vpop.f32.mrb[23].mxu0 }
 0x214   : > { %v2946_v18 = vmul.f32 %v3803_v13, %v5089_v17  ;;  %v3805_v11 = vadd.f32 %v2840_v62, %v1982_v3 }
 0x215   : > { %v2987_v57 = vadd.f32 %v5095_v12, %v2948_v24  ;;  %v2949_v54 = vmul.f32 %v3804_v49, %v5089_v17 }
 0x216   : > { %v2985_v52 = vadd.f32 %v5095_v12, %v2946_v18  ;;  %v2947_v35 = vmul.f32 %v3805_v11, %v5089_v17 }
 0x217   : > { %3019 = vst [vmem:[%s5101_s22 + $0xb0] sm:$0xff] %v2987_v57  ;;  %v2988_v38 = vadd.f32 %v5095_v12, %v2949_v54 }
 0x218   : > { %3017 = vst [vmem:[%s5101_s22 + $0xa0] sm:$0xff] %v2985_v52  ;;  %v2986_v42 = vadd.f32 %v5095_v12, %v2947_v35  ;;  %v3638_v51 = vpop.f32.mrb[24].mxu1  ;;  %v3774_v21 = vpop.f32.mrb[24].mxu0 }
 0x219   : > { %3020 = vst [vmem:[%s5101_s22 + $0xb8] sm:$0xff] %v2988_v38  ;;  %v3806_v1 = vadd.f32 %v3774_v21, %v3638_v51  ;;  %v1995_v23 = vpop.f32.mrb[25].mxu1  ;;  %v2853_v31 = vpop.f32.mrb[25].mxu0 }
 0x21a   : > { %3018 = vst [vmem:[%s5101_s22 + $0xa8] sm:$0xff] %v2986_v42  ;;  %v3807_v58 = vadd.f32 %v2853_v31, %v1995_v23  ;;  %v3639_v63 = vpop.f32.mrb[26].mxu1  ;;  %v3775_v6 = vpop.f32.mrb[26].mxu0 }
 0x21b   : > { %v2952_v0 = vmul.f32 %v3806_v1, %v5089_v17  ;;  %v3808_v50 = vadd.f32 %v3775_v6, %v3639_v63  ;;  %v1998_v55 = vpop.f32.mrb[27].mxu1  ;;  %v2856_v37 = vpop.f32.mrb[27].mxu0 }
 0x21c   : > { %v2950_v46 = vmul.f32 %v3807_v58, %v5089_v17  ;;  %v3809_v32 = vadd.f32 %v2856_v37, %v1998_v55 }
 0x21d   : > { %v2991_v30 = vadd.f32 %v5095_v12, %v2952_v0  ;;  %v2953_v27 = vmul.f32 %v3808_v50, %v5089_v17 }
 0x21e   : > { %v2989_v20 = vadd.f32 %v5095_v12, %v2950_v46  ;;  %v2951_v45 = vmul.f32 %v3809_v32, %v5089_v17 }
 0x21f   : > { %3023 = vst [vmem:[%s5101_s22 + $0xd0] sm:$0xff] %v2991_v30  ;;  %v2992_v53 = vadd.f32 %v5095_v12, %v2953_v27 }
 0x220   : > { %3021 = vst [vmem:[%s5101_s22 + $0xc0] sm:$0xff] %v2989_v20  ;;  %v2990_v9 = vadd.f32 %v5095_v12, %v2951_v45  ;;  %v3642_v4 = vpop.f32.mrb[28].mxu1  ;;  %v3778_v2 = vpop.f32.mrb[28].mxu0 }
 0x221   : > { %3024 = vst [vmem:[%s5101_s22 + $0xd8] sm:$0xff] %v2992_v53  ;;  %v3810_v5 = vadd.f32 %v3778_v2, %v3642_v4  ;;  %v2011_v22 = vpop.f32.mrb[29].mxu1  ;;  %v2869_v14 = vpop.f32.mrb[29].mxu0 }
 0x222   : > { %3022 = vst [vmem:[%s5101_s22 + $0xc8] sm:$0xff] %v2990_v9  ;;  %v3811_v25 = vadd.f32 %v2869_v14, %v2011_v22  ;;  %v3643_v41 = vpop.f32.mrb[30].mxu1  ;;  %v3779_v10 = vpop.f32.mrb[30].mxu0 }
 0x223   : > { %v2956_v34 = vmul.f32 %v3810_v5, %v5089_v17  ;;  %v3812_v40 = vadd.f32 %v3779_v10, %v3643_v41  ;;  %v2014_v59 = vpop.f32.mrb[31].mxu1  ;;  %v2872_v43 = vpop.f32.mrb[31].mxu0 }
 0x224   : > { %v2954_v16 = vmul.f32 %v3811_v25, %v5089_v17  ;;  %v3813_v28 = vadd.f32 %v2872_v43, %v2014_v59 }
 0x225   : > { %v2995_v7 = vadd.f32 %v5095_v12, %v2956_v34  ;;  %v2957_v8 = vmul.f32 %v3812_v40, %v5089_v17 }
 0x226   : > { %v2993_v61 = vadd.f32 %v5095_v12, %v2954_v16  ;;  %v2955_v15 = vmul.f32 %v3813_v28, %v5089_v17 }
 0x227   : > { %3027 = vst [vmem:[%s5101_s22 + $0xf0] sm:$0xff] %v2995_v7  ;;  %v2996_v29 = vadd.f32 %v5095_v12, %v2957_v8 }
 0x228   : > { %3025 = vst [vmem:[%s5101_s22 + $0xe0] sm:$0xff] %v2993_v61  ;;  %v2994_v26 = vadd.f32 %v5095_v12, %v2955_v15 }
 0x229   : > { %3028 = vst [vmem:[%s5101_s22 + $0xf8] sm:$0xff] %v2996_v29 }
 0x22a   : > { %3026 = vst [vmem:[%s5101_s22 + $0xe8] sm:$0xff] %v2994_v26 }
 0x22b PF: > { %s16_s17 = sadd.s32 1, %s4087_s17  }
 0x22c   : > { %p13_p4 = scmp.ge.s32.totalorder %s16_s17, 4  }
 0x22e   :  { %15 = sbr.rel (!%p13_p4) target bundleno = 3 (0x3), region = 74 }

</bundles_post_ra>
